<compile_context>
chip_gen: v5e
topology: v5e:2x2
jax: 0.10.0
libtpu: 0.0.40
codegen_flags: <defaults>
</compile_context>

<pallas_src>
import jax
import jax.numpy as jnp
from jax.experimental import pallas as pl
from jax.experimental.pallas import tpu as pltpu

GAMMA = 0.95
ENTROPY_WEIGHT = 0.01   # has no effect: entropy is identically 0 (see header note)

# Problem sizes (small, deterministic).
T = 8          # steps per episode
S = 32         # state dim
H = 32         # value-net hidden dim
A = 16         # number of actions
B = 64         # episodes per pallas_call (batched)
BE = 32        # episodes per grid block -> BE*T = 256 rows per block (fills MXU)
NB = B // BE   # grid size
NBT = BE * T   # rows per block
LANE = 128

# Lane layout of the "x" half of the packed slab.
ONES_COL = S         # 32 : ones column (carries b1/b2 through the folded weights)
PSEL_COL = S + 1     # 33 : gathered action probability
REW_COL = S + 2      # 34 : reward
GMASK_COL = S + 3    # 35 : gamma * (step is not last in its episode)


def actor_critic_kernel(slab_ref, w1_ref, out_ref):
    # slab_ref: [NBT, 2*LANE]  lanes 0..127 = states_aug + per-step scalars,
    #                          lanes 128..255 = action-selected w2 column + b2.
    # w1_ref  : [LANE, LANE]   augmented layer-1 weights (zero beyond row S / col H).
    # out_ref : [BE, LANE]     per-episode loss broadcast across all 128 lanes.
    slab = slab_ref[...]                       # [NBT, 256]
    x = slab[:, :LANE]                         # [NBT, 128]
    wsel = slab[:, LANE:]                      # [NBT, 128]

    # Value-net layer 1 (bias folded, ones-column passthrough) on the MXU.
    # Lanes >= H+1 of h are relu(0) = 0, so the scalar lanes of `x` never leak in.
    h = jnp.maximum(
        jnp.dot(x, w1_ref[...], preferred_element_type=jnp.float32), 0.0)   # [NBT,128]

    # q[n] = value_net(state_n)[action_n] = <h_n, [w2[:,a_n]; b2[a_n]; 0...]>
    q = jnp.sum(h * wsel, axis=-1, keepdims=True)                           # [NBT,1]

    p_sel = x[:, PSEL_COL:PSEL_COL + 1]        # [NBT,1] gathered probability
    rew = x[:, REW_COL:REW_COL + 1]            # [NBT,1]
    gmask = x[:, GMASK_COL:GMASK_COL + 1]      # [NBT,1] gamma * not-last-step
    logp = jnp.log(p_sel)                      # EUP

    # q_next[n] = q[n+1] within the episode, 0 at the last step (mask kills both the
    # episode boundary and the block-wraparound row).
    q_next = pltpu.roll(q, shift=NBT - 1, axis=0) * gmask                   # gamma included

    # Fused per-row policy+critic contribution (entropy term is identically 0):
    #   loss = -sum_t (logp + reward + gamma*q_next - q) * q
    contrib = (logp + rew + q_next - q) * q                                 # [NBT,1]

    # Per-episode pooling AND lane-dense output tile in one small matmul:
    # pool[b, n] = 1 iff row n belongs to local episode b.
    b_idx = jax.lax.broadcasted_iota(jnp.int32, (BE, NBT), 0)
    n_idx = jax.lax.broadcasted_iota(jnp.int32, (BE, NBT), 1)
    pool = jnp.logical_and(n_idx >= b_idx * T,
                           n_idx < (b_idx + 1) * T).astype(jnp.float32)     # [BE,NBT]
    contrib_b = jnp.broadcast_to(contrib, (NBT, LANE))                      # [NBT,128]
    out_ref[...] = -jnp.dot(pool, contrib_b, preferred_element_type=jnp.float32)


def actor_critic_loss(states, w1, b1, w2, b2, probs, actions, rewards):
    """Per-episode actor-critic loss for B episodes in a single pallas_call.

    states [B,T,S], probs [B,T,A], actions [B,T] int32, rewards [B,T].
    Returns [B] f32, element b equals ActorCriticLoss.forward(episode b).
    """
    B_, T_, S_ = states.shape
    A_ = probs.shape[-1]
    H_ = w1.shape[1]
    assert (B_, T_, S_, A_, H_) == (B, T, S, A, H)
    N = B_ * T_

    flat_states = states.reshape(N, S_).astype(jnp.float32)
    flat_actions = actions.reshape(N)
    flat_probs = probs.reshape(N, A_)
    flat_rewards = rewards.reshape(N).astype(jnp.float32)

    # Host-side gathers (perf review: probs / onehot / w2 columns never enter kernel).
    p_sel = jnp.take_along_axis(flat_probs, flat_actions[:, None], axis=1)[:, 0]
    w2_sel = w2.T[flat_actions]                 # [N, H]
    b2_sel = b2[0][flat_actions]                # [N]
    not_last = (jnp.arange(N) % T_ != T_ - 1).astype(jnp.float32)

    # Packed lane-dense per-step slab (one DMA instead of five).
    x_half = jnp.zeros((N, LANE), jnp.float32)
    x_half = x_half.at[:, :S_].set(flat_states)
    x_half = x_half.at[:, ONES_COL].set(1.0)
    x_half = x_half.at[:, PSEL_COL].set(p_sel)
    x_half = x_half.at[:, REW_COL].set(flat_rewards)
    x_half = x_half.at[:, GMASK_COL].set(GAMMA * not_last)

    w_half = jnp.zeros((N, LANE), jnp.float32)
    w_half = w_half.at[:, :H_].set(w2_sel)
    w_half = w_half.at[:, H_].set(b2_sel)

    slab = jnp.concatenate([x_half, w_half], axis=1)            # [N, 256]

    # Augmented layer-1 weights: [states|1]@w1aug = [states@w1 + b1 | 1 | 0...]
    # (column H must stay exactly 1.0 f32 so b2 rides through the reduce).
    w1_aug = jnp.zeros((LANE, LANE), jnp.float32)
    w1_aug = w1_aug.at[:S_, :H_].set(w1)
    w1_aug = w1_aug.at[S_, :H_].set(b1[0])
    w1_aug = w1_aug.at[S_, H_].set(1.0)

    out = pl.pallas_call(
        actor_critic_kernel,
        out_shape=jax.ShapeDtypeStruct((B_, LANE), jnp.float32),
        grid_spec=pltpu.PrefetchScalarGridSpec(
            num_scalar_prefetch=0,
            grid=(NB,),
            in_specs=[pl.BlockSpec((NBT, 2 * LANE), lambda i: (i, 0)),
                      pl.BlockSpec((LANE, LANE), lambda i: (0, 0))],
            out_specs=pl.BlockSpec((BE, LANE), lambda i: (i, 0))),
        compiler_params=pltpu.CompilerParams(
            dimension_semantics=("parallel",)),   # v7x: shard blocks over 2 TCs
    )(slab, w1_aug)
    return out[:, 0]                                            # [B]


def reference_losses(states, w1, b1, w2, b2, probs, actions, rewards):
    # Faithful per-episode re-derivation of the PyTorch forward (including the dead
    # "entropy" branch) for the correctness check.
    h = jnp.maximum(jnp.einsum('bts,sh->bth', states, w1) + b1[0], 0.0)
    logits = jnp.einsum('bth,ha->bta', h, w2) + b2[0]
    q = jnp.take_along_axis(logits, actions[..., None], axis=-1)[..., 0]    # [B,T]
    p = jnp.take_along_axis(probs, actions[..., None], axis=-1)[..., 0]     # [B,T]
    logp = jnp.log(p)
    ent = -(logp * jnp.log(logp))            # NaN for p in (0,1) — the PyTorch quirk
    ent = jnp.where(jnp.isnan(ent), 0.0, ent)
    entropy = jnp.sum(ent, axis=-1)
    policy_loss = -jnp.sum(logp * q, axis=-1) - ENTROPY_WEIGHT * entropy
    q_next = jnp.concatenate(
        [q[:, 1:], jnp.zeros((q.shape[0], 1), jnp.float32)], axis=1)
    td = rewards + GAMMA * q_next - q
    critic_loss = -jnp.sum(td * q, axis=-1)
    return policy_loss + critic_loss                                        # [B]


if __name__ == "__main__":
    key = jax.random.PRNGKey(0)
    ks = jax.random.split(key, 8)

    # Dense batched episode_info equivalent: B episodes of T steps.
    states = jax.random.normal(ks[0], (B, T, S), dtype=jnp.float32)
    probs = jax.nn.softmax(
        jax.random.normal(ks[1], (B, T, A), dtype=jnp.float32), axis=-1)
    actions = jax.random.randint(ks[2], (B, T), 0, A)
    rewards = jax.random.normal(ks[3], (B, T), dtype=jnp.float32)

    # Deterministic value-net parameters (2-layer MLP: S -> H -> A).
    w1 = jax.random.normal(ks[4], (S, H), dtype=jnp.float32) * 0.1
    b1 = jax.random.normal(ks[5], (1, H), dtype=jnp.float32) * 0.1
    w2 = jax.random.normal(ks[6], (H, A), dtype=jnp.float32) * 0.1
    b2 = jax.random.normal(ks[7], (1, A), dtype=jnp.float32) * 0.1

    losses = actor_critic_loss(states, w1, b1, w2, b2, probs, actions, rewards)
    losses = jax.block_until_ready(losses)

    ref = reference_losses(states, w1, b1, w2, b2, probs, actions, rewards)
    assert losses.shape == (B,)
    assert jnp.allclose(losses, ref, rtol=1e-4, atol=1e-3), (losses, ref)

    # TODO(synk): target-net syncing / episode counters / experience-replay bookkeeping
    # are host-side Python control flow in the module and are not expressed in the kernel.
    print("KERNEL_OK")
</pallas_src>

<mosaic_0001>
module attributes {stable_mosaic.version = 11 : i64} {
  func.func @actor_critic_kernel(%arg0: i32, %arg1: memref<256x256xf32, #tpu.memory_space<vmem>>, %arg2: memref<128x128xf32, #tpu.memory_space<vmem>>, %arg3: memref<32x128xf32, #tpu.memory_space<vmem>>) attributes {dimension_semantics = [#tpu.dimension_semantics<parallel>], iteration_bounds = array<i64: 2>, scalar_prefetch = 0 : i64, scratch_operands = 0 : i64, tpu.core_type = #tpu.core_type<tc>, window_params = [{transform_indices = @transform_0, window_bounds = array<i64: 256, 256>}, {pipeline_mode = #tpu.pipeline_mode<synchronous>, transform_indices = @transform_1, window_bounds = array<i64: 128, 128>}, {transform_indices = @transform_2, window_bounds = array<i64: 32, 128>}]} {
    %c0 = arith.constant 0 : index
    %c0_0 = arith.constant 0 : index
    %0 = vector.load %arg1[%c0, %c0_0] : memref<256x256xf32, #tpu.memory_space<vmem>>, vector<256x256xf32>
    %1 = vector.extract_strided_slice %0 {offsets = [0, 0], sizes = [256, 128], strides = [1, 1]} : vector<256x256xf32> to vector<256x128xf32>
    %2 = vector.extract_strided_slice %0 {offsets = [0, 128], sizes = [256, 128], strides = [1, 1]} : vector<256x256xf32> to vector<256x128xf32>
    %c0_1 = arith.constant 0 : index
    %c0_2 = arith.constant 0 : index
    %3 = vector.load %arg2[%c0_1, %c0_2] : memref<128x128xf32, #tpu.memory_space<vmem>>, vector<128x128xf32>
    %cst = arith.constant dense<0.000000e+00> : vector<256x128xf32>
    %4 = tpu.matmul %1, %3, %cst {dimension_numbers = #tpu.dot_dimension_numbers<[1], [0], [0], [1], [0, 0, 1, 1], [], []>} : vector<256x128xf32>, vector<128x128xf32>, vector<256x128xf32> -> vector<256x128xf32>
    %cst_3 = arith.constant 0.000000e+00 : f32
    %5 = vector.broadcast %cst_3 : f32 to vector<256x128xf32>
    %6 = arith.maximumf %4, %5 : vector<256x128xf32>
    %7 = arith.mulf %6, %2 : vector<256x128xf32>
    %cst_4 = arith.constant dense<0.000000e+00> : vector<256xf32>
    %8 = vector.multi_reduction <add>, %7, %cst_4 [1] : vector<256x128xf32> to vector<256xf32>
    %9 = vector.shape_cast %8 : vector<256xf32> to vector<256x1xf32>
    %10 = vector.extract_strided_slice %1 {offsets = [0, 33], sizes = [256, 1], strides = [1, 1]} : vector<256x128xf32> to vector<256x1xf32>
    %11 = vector.extract_strided_slice %1 {offsets = [0, 34], sizes = [256, 1], strides = [1, 1]} : vector<256x128xf32> to vector<256x1xf32>
    %12 = vector.extract_strided_slice %1 {offsets = [0, 35], sizes = [256, 1], strides = [1, 1]} : vector<256x128xf32> to vector<256x1xf32>
    %13 = math.log %10 : vector<256x1xf32>
    %c255_i32 = arith.constant 255 : i32
    %14 = tpu.dynamic_rotate %9 by %c255_i32 dim 0 : vector<256x1xf32>, i32 -> vector<256x1xf32>
    %15 = arith.mulf %14, %12 : vector<256x1xf32>
    %16 = arith.addf %13, %11 : vector<256x1xf32>
    %17 = arith.addf %16, %15 : vector<256x1xf32>
    %18 = arith.subf %17, %9 : vector<256x1xf32>
    %19 = arith.mulf %18, %9 : vector<256x1xf32>
    %20 = tpu.iota {dimensions = array<i32: 0>} : vector<32x256xi32>
    %21 = tpu.iota {dimensions = array<i32: 1>} : vector<32x256xi32>
    %c8_i32 = arith.constant 8 : i32
    %22 = vector.broadcast %c8_i32 : i32 to vector<32x256xi32>
    %23 = arith.muli %20, %22 : vector<32x256xi32>
    %24 = arith.cmpi sge, %21, %23 : vector<32x256xi32>
    %c1_i32 = arith.constant 1 : i32
    %25 = vector.broadcast %c1_i32 : i32 to vector<32x256xi32>
    %26 = arith.addi %20, %25 : vector<32x256xi32>
    %c8_i32_5 = arith.constant 8 : i32
    %27 = vector.broadcast %c8_i32_5 : i32 to vector<32x256xi32>
    %28 = arith.muli %26, %27 : vector<32x256xi32>
    %29 = arith.cmpi slt, %21, %28 : vector<32x256xi32>
    %30 = arith.andi %24, %29 : vector<32x256xi1>
    %31 = arith.extui %30 : vector<32x256xi1> to vector<32x256xi32>
    %32 = arith.sitofp %31 : vector<32x256xi32> to vector<32x256xf32>
    %33 = vector.shape_cast %19 : vector<256x1xf32> to vector<256x1xf32>
    %34 = vector.broadcast %33 : vector<256x1xf32> to vector<256x128xf32>
    %cst_6 = arith.constant dense<0.000000e+00> : vector<32x128xf32>
    %35 = tpu.matmul %32, %34, %cst_6 {dimension_numbers = #tpu.dot_dimension_numbers<[1], [0], [0], [1], [0, 0, 1, 1], [], []>} : vector<32x256xf32>, vector<256x128xf32>, vector<32x128xf32> -> vector<32x128xf32>
    %cst_7 = arith.constant 0.000000e+00 : f32
    %36 = vector.broadcast %cst_7 : f32 to vector<32x128xf32>
    %37 = arith.subf %36, %35 : vector<32x128xf32>
    %c0_8 = arith.constant 0 : index
    %c0_9 = arith.constant 0 : index
    %38 = vector.load %arg3[%c0_8, %c0_9] : memref<32x128xf32, #tpu.memory_space<vmem>>, vector<32x128xf32>
    tpu.vector_store %arg3[%c0_8, %c0_9], %37 {strides = array<i32>} : memref<32x128xf32, #tpu.memory_space<vmem>>, vector<32x128xf32>,
    return
  }
  func.func @transform_0(%arg0: i32) -> (i32, i32) {
    %c0_i32 = arith.constant 0 : i32
    %c0_i32_0 = arith.constant 0 : i32
    return %arg0, %c0_i32 : i32, i32
  }
  func.func @transform_1(%arg0: i32) -> (i32, i32) {
    %c0_i32 = arith.constant 0 : i32
    %c0_i32_0 = arith.constant 0 : i32
    %c0_i32_1 = arith.constant 0 : i32
    return %c0_i32, %c0_i32_0 : i32, i32
  }
  func.func @transform_2(%arg0: i32) -> (i32, i32) {
    %c0_i32 = arith.constant 0 : i32
    %c0_i32_0 = arith.constant 0 : i32
    return %arg0, %c0_i32 : i32, i32
  }
}

</mosaic_0001>

<bundles_post_ra>
// kernel: tpu_custom_call.1
= control target key start
LH: loop header
LB: loop body
LE: loop exit
PB: predicated region body
PF: predicated region fallthrough
CT: control target
= control target key end

     0   :  { %7 = vsyncpa [#allocation3], 0  ;;  %s3046_s0 = inlined_call_operand.hbm [shape: f32[512,256], index: 0, kind: input, shape index: {}]   ;;  %s3047_s1 = inlined_call_operand.hbm [shape: f32[128,128], index: 1, kind: input, shape index: {}]   ;;  %s3048_s2 = inlined_call_operand.hbm [shape: f32[64,128], index: 2, kind: output, shape index: {}]  }
   0x1   :  { %9 = vsyncpa [#allocation3 + $0x1], 0 }
   0x2   :  { %10 = vsyncpa [#allocation6], 0 }
   0x3   :  { %11 = vsyncpa [#allocation4], 0 }
   0x4   :  { %13 = vsyncpa [#allocation4 + $0x1], 0  ;;  %s2017_s9 = smov 0   ;;  %s2019_s10 = smov 0  }
   0x5   :  { %s2021_s11 = smov 0   ;;  %s2023_s12 = smov 0  }
   0x6 LB: > { %s2038_s13 = sadd.s32 4294967295, %s1988_s12   ;;  %s1531_s14 = sadd.s32 4294967294, %s1988_s12   ;;  %s1988_s12 = sphi %s2023_s12, %s3166_s12   ;;  %s1984_s11 = sphi %s2021_s11, %s3165_s11   ;;  %s1980_s10 = sphi %s2019_s10, %s3164_s10   ;;  %s1976_s9 = sphi %s2017_s9, %s3163_s9  }
   0x7   : > { %p39_p0 = scmp.ne.s32.totalorder %s1980_s10, %s1976_s9  ;;  %p40_p1 = scmp.eq.s32.totalorder %s2038_s13, 0 }
   0x8   : > { %p84_p2 = scmp.eq.s32.totalorder %s2038_s13, 1  ;;  %p90_p3 = scmp.eq.s32.totalorder %s1531_s14, 1 }
   0x9   : > { %p2047_p4 = por %p40_p1, %p39_p0  ;;  %p1532_p5 = scmp.ge.s32.totalorder %s1988_s12, 1 }
   0xa   : > { %p2052_p6 = por %p90_p3, %p39_p0  ;;  %p97_p7 = scmp.lt.s32.totalorder %s1988_s12, 3 }
   0xb   : > { %s108_s19 = sshll.u32 %s3047_s1, 4  ;;  %s1990_s21 = smov [#allocation5]   ;;  %s109_s19 = int_to_ptr.hbm [resolvable:$true] %s108_s19 }
   0xc   : > { %p2060_p8 = pnand %p1532_p5, %p97_p7  ;;  %s110_s22 = sshll.u32 %s1990_s21, 4  ;;  %s111_s22 = int_to_ptr.vmem [resolvable:$true] %s110_s22 }
   0xd   : > { %s2070_s23 = sadd.s32 1, %s1988_s12   ;;  %s1991_s24 = smov 128  }
   0xe   : > { %p1623_p9 = pneg %p2060_p8  ;;  %s1992_s25 = smov 8  }
   0xf   : > { %s23_s26 = ssub.s32 %s1988_s12, %s2070_s23  ;;  %s26_s27 = sadd.s32 1, %s1984_s11 }
  0x10   : > { %p1624_p10 = pnand %p1623_p9, %p40_p1  ;;  %p24_p12 = scmp.eq.s32.totalorder %s23_s26, 0 }
  0x11   : > { %p33_p13 = scmp.ne.s32.totalorder %s1984_s11, %s1980_s10  ;;  %p34_p0 = scmp.eq.s32.totalorder %s1988_s12, 0 }
  0x12   : > { %1626 = dma.hbm_to_vmem [thread:$0]  (!%p1624_p10), %s109_s19, 2048, %s111_s22, [#allocation6], %s1991_s24, %s1991_s24, %s1992_s25  }
  0x13   : > { %p1636_p3 = scmp.lt.s32.totalorder %s1988_s12, 2  ;;  %p35_p5 = por %p34_p0, %p33_p13 }
  0x14   : > { %s2080_s28 = scalar_select %p24_p12, %s1984_s11, %s26_s27  }
  0x15   : > { %p2084_p7 = por %p84_p2, %p33_p13  ;;  %s124_s30 = sand.u32 1, %s1984_s11  }
  0x16   : > { %s1565_s3 = sshll.u32 %s1988_s12, 9  ;;  %s1535_s4 = sshll.u32 %s124_s30, 9 }
  0x17   : > { %s134_s7 = scalar_lea.hbm %s3046_s0, %s1565_s3  ;;  %s128_s14 = scalar_lea.vmem [#allocation2], %s1535_s4 }
  0x18   : > { %s135_s8 = sshll.u32 %s134_s7, 4  ;;  %s137_s17 = sshll.u32 %s128_s14, 4  ;;  %s136_s8 = int_to_ptr.hbm [resolvable:$true] %s135_s8  ;;  %s138_s17 = int_to_ptr.vmem [resolvable:$true] %s137_s17 }
  0x19   : > { %p2095_p9 = pnand %p1636_p3, %p35_p5  ;;  %s125_s19 = scalar_lea.sflag [#allocation3], %s124_s30 }
  0x1a   : > { %s1888_s21 = sshra.s32 %s136_s8, 4  ;;  %s1895_s26 = scalar_lea.hbm %s3046_s0, 1024  ;;  %s1889_s21 = int_to_ptr.hbm [resolvable:$true] %s1888_s21 }
  0x1b   : > { %s1890_s22 = scalar_lea.hbm %s1889_s21, 512  ;;  %p1892_p10 = pneg %p2095_p9 }
  0x1c   : > { %p1891_p2 = scmp.ne.s32.totalorder %s1889_s21, %s1890_s22  ;;  %p1896_p0 = scmp.lt.s32.totalorder %s1889_s21, %s3046_s0 }
  0x1d   : > { %p1897_p3 = scmp.lt.s32.totalorder %s1895_s26, %s1890_s22 }
  0x1e   : > { %p1893_p12 = pnand %p1892_p10, %p1891_p2 }
  0x1f   : > { %p1898_p5 = por %p1897_p3, %p1896_p0 }
  0x20   : > { %p1894_p13 = pneg %p1893_p12 }
  0x22   : > { %p1899_p11 = pnand %p1898_p5, %p1894_p13 }
  0x24   : > { %1902 = shalt.err (!%p1899_p11)
}
  0x25   : > { %s1993_s30 = smov 256   ;;  %s1994_s4 = smov 16  }
  0x26   : > { %1630 = dma.hbm_to_vmem [thread:$0]  (!%p2095_p9), %s136_s8, 8192, %s138_s17, %s125_s19, %s1993_s30, %s1993_s30, %s1994_s4  }
  0x27   : > { %149 = sbr.rel (%p2060_p8) target bundleno = 985 (0x3d9), region = 28 }
  0x2c   : > { %s2112_s5 = sand.u32 1, %s1980_s10  }
  0x2d   : > { %s1540_s6 = sshll.u32 %s2112_s5, 9  ;;  %s152_s7 = scalar_lea.sflag [#allocation3], %s2112_s5 }
  0x2e   : > { %s2116_s14 = scalar_lea.vmem [#allocation2], %s1540_s6 }
  0x2f   : > { %1963 = dma.done.wait (%p2047_p4), %s152_s7, 8192  }
  0x30   : > { %1965 = vsyncadd (%p2047_p4), %s152_s7, 4294959104 }
  0x31   : > { %1967 = dma.done.wait (%p40_p1), [#allocation6], 2048  }
  0x32   : > { %1969 = vsyncadd (%p40_p1), [#allocation6], 4294965248  ;;  %v263_v0 = vld [vmem:[#allocation5 + $0x78] sm:$0xff]  ;;  %v2127_v1 = vld [vmem:[%s2116_s14 + $0x10] sm:$0xff]  ;;  %s1995_s20 = smov 93   ;;  %s1996_s15 = smov 127  }
  0x33   : > { %v2130_v2 = vld [vmem:[%s2116_s14] sm:$0xff]  ;;  %264 = vmatpush.msra.mxu0 %v263_v0  ;;  %1567 = vmatpush.msra.mxu1 %v263_v0  ;;  %v262_v3 = vld [vmem:[#allocation5 + $0x70] sm:$0xff]  ;;  %v261_v4 = vld [vmem:[#allocation5 + $0x68] sm:$0xff]  ;;  %s1997_s8 = smov 33   ;;  %s1542_s17 = sshll.u32 %s2112_s5, 5 }
  0x34   : > { %670 = vrot.lane.b32.xlu0 %v2127_v1, %s1995_s20  ;;  %668 = vrot.lane.b32.xlu2 %v2130_v2, %s1995_s20  ;;  %v2137_v5 = vld [vmem:[%s2116_s14 + $0x20] sm:$0xff]  ;;  %v259_v7 = vld [vmem:[#allocation5 + $0x58] sm:$0xff]  ;;  %v2145_v9 = vld [vmem:[%s2116_s14 + $0x30] sm:$0xff]  ;;  %s181_s18 = scalar_lea.vmem [#allocation7], %s1542_s17  ;;  %s1566_s19 = sshll.u32 %s2038_s13, 5 }
  0x35   : > { %1568 = vmatpush.msra.mxu2 %v263_v0  ;;  %265 = vmatpush.msra.mxu0 %v262_v3  ;;  %v260_v6 = vld [vmem:[#allocation5 + $0x60] sm:$0xff]  ;;  %v258_v10 = vld [vmem:[#allocation5 + $0x50] sm:$0xff]  ;;  %v257_v11 = vld [vmem:[#allocation5 + $0x48] sm:$0xff]  ;;  %s1444_s24 = scalar_lea.hbm %s3048_s2, %s1566_s19  ;;  %s1445_s25 = sshll.u32 %s181_s18, 4  ;;  %s1446_s25 = int_to_ptr.vmem [resolvable:$true] %s1445_s25 }
  0x36   : > { %1570 = vmatpush.msra.mxu1 %v262_v3  ;;  %672 = vrot.lane.b32.xlu1 %v2137_v5, %s1995_s20  ;;  %v2142_v8 = vld [vmem:[%s2116_s14 + $0x40] sm:$0xff]  ;;  %v255_v14 = vld [vmem:[#allocation5 + $0x38] sm:$0xff]  ;;  %v2157_v15 = vld [vmem:[%s2116_s14 + $0x70] sm:$0xff]  ;;  %s1447_s26 = sshll.u32 %s1444_s24, 4  ;;  %s1433_s27 = scalar_lea.sflag [#allocation4], %s2112_s5  ;;  %s1448_s26 = int_to_ptr.hbm [resolvable:$true] %s1447_s26 }
  0x37   : > { %1571 = vmatpush.msra.mxu2 %v262_v3  ;;  %266 = vmatpush.msra.mxu0 %v261_v4  ;;  %v2152_v12 = vld [vmem:[%s2116_s14 + $0x60] sm:$0xff]  ;;  %v2160_v16 = vld [vmem:[%s2116_s14 + $0x50] sm:$0xff]  ;;  %v253_v18 = vld [vmem:[#allocation5 + $0x28] sm:$0xff]  ;;  %s1932_s3 = sshra.s32 %s1448_s26, 4  ;;  %s1938_s6 = scalar_lea.hbm %s3048_s2, 64  ;;  %s1933_s3 = int_to_ptr.hbm [resolvable:$true] %s1932_s3 }
  0x38   : > { %1573 = vmatpush.msra.mxu1 %v261_v4  ;;  %1569 = vmatpush.msra.mxu3 %v263_v0  ;;  %v256_v13 = vld [vmem:[#allocation5 + $0x40] sm:$0xff]  ;;  %v254_v17 = vld [vmem:[#allocation5 + $0x30] sm:$0xff]  ;;  %v251_v21 = vld [vmem:[#allocation5 + $0x18] sm:$0xff]  ;;  %s1934_s13 = scalar_lea.hbm %s1933_s3, 32  ;;  %p1939_p11 = scmp.lt.s32.totalorder %s1933_s3, %s3048_s2 }
  0x39   : > { %1574 = vmatpush.msra.mxu2 %v261_v4  ;;  %267 = vmatpush.msra.mxu0 %v260_v6  ;;  %v252_v19 = vld [vmem:[#allocation5 + $0x20] sm:$0xff]  ;;  %v2167_v20 = vld [vmem:[%s2116_s14 + $0x90] sm:$0xff]  ;;  %v249_v25 = vld [vmem:[#allocation5 + $0x8] sm:$0xff]  ;;  %p1935_p1 = scmp.ne.s32.totalorder %s1933_s3, %s1934_s13  ;;  %p1940_p9 = scmp.lt.s32.totalorder %s1938_s6, %s1934_s13 }
  0x3a   : > { %1576 = vmatpush.msra.mxu1 %v260_v6  ;;  %1572 = vmatpush.msra.mxu3 %v262_v3  ;;  %v2170_v22 = vld [vmem:[%s2116_s14 + $0xa0] sm:$0xff]  ;;  %v250_v24 = vld [vmem:[#allocation5 + $0x10] sm:$0xff]  ;;  %v205_v53 = vld [vmem:[%s2116_s14 + $0xa8] sm:$0xff] }
  0x3b   : > { %1577 = vmatpush.msra.mxu2 %v260_v6  ;;  %268 = vmatpush.msra.mxu0 %v259_v7  ;;  %v2175_v23 = vld [vmem:[%s2116_s14 + $0x80] sm:$0xff]  ;;  %v2187_v28 = vld [vmem:[%s2116_s14 + $0xd0] sm:$0xff]  ;;  %v185_v54 = vld [vmem:[%s2116_s14 + $0x8] sm:$0xff]  ;;  %p1936_p4 = pnand %p1935_p1, %p2084_p7  ;;  %p1941_p2 = por %p1940_p9, %p1939_p11 }
  0x3c   : > { %1579 = vmatpush.msra.mxu1 %v259_v7  ;;  %676 = vrot.lane.b32.xlu0 %v2142_v8, %s1995_s20  ;;  %v248_v26 = vld [vmem:[#allocation5] sm:$0xff]  ;;  %v2190_v29 = vld [vmem:[%s2116_s14 + $0xb0] sm:$0xff]  ;;  %v207_v0 = vld [vmem:[%s2116_s14 + $0xb8] sm:$0xff] }
  0x3d   : > { %674 = vrot.lane.b32.xlu2 %v2145_v9, %s1995_s20  ;;  %1580 = vmatpush.msra.mxu2 %v259_v7  ;;  %v2182_v27 = vld [vmem:[%s2116_s14 + $0xc0] sm:$0xff]  ;;  %v2203_v31 = vld [vmem:[%s2116_s14 + $0xf0] sm:$0xff]  ;;  %p1937_p8 = pneg %p1936_p4 }
  0x3e   : > { %269 = vmatpush.msra.mxu0 %v258_v10  ;;  %1582 = vmatpush.msra.mxu1 %v258_v10  ;;  %v2195_v30 = vld [vmem:[%s2116_s14 + $0x100] sm:$0xff]  ;;  %v2213_v33 = vld [vmem:[%s2116_s14 + $0x110] sm:$0xff] }
  0x3f   : > { %1583 = vmatpush.msra.mxu2 %v258_v10  ;;  %1575 = vmatpush.msra.mxu3 %v261_v4  ;;  %v2208_v32 = vld [vmem:[%s2116_s14 + $0xe0] sm:$0xff]  ;;  %v2230_v36 = vld [vmem:[%s2116_s14 + $0x130] sm:$0xff]  ;;  %p1942_p10 = pnand %p1941_p2, %p1937_p8 }
  0x40   : > { %270 = vmatpush.msra.mxu0 %v257_v11  ;;  %1585 = vmatpush.msra.mxu1 %v257_v11  ;;  %v2216_v34 = vld [vmem:[%s2116_s14 + $0x160] sm:$0xff]  ;;  %v2235_v37 = vld [vmem:[%s2116_s14 + $0x170] sm:$0xff] }
  0x41   : > { %1586 = vmatpush.msra.mxu2 %v257_v11  ;;  %680 = vrot.lane.b32.xlu1 %v2152_v12, %s1995_s20  ;;  %v2225_v35 = vld [vmem:[%s2116_s14 + $0x120] sm:$0xff]  ;;  %v2244_v38 = vld [vmem:[%s2116_s14 + $0x150] sm:$0xff] }
  0x42   : > { %271 = vmatpush.msra.mxu0 %v256_v13  ;;  %1588 = vmatpush.msra.mxu1 %v256_v13  ;;  %v2249_v39 = vld [vmem:[%s2116_s14 + $0x140] sm:$0xff]  ;;  %v2265_v41 = vld [vmem:[%s2116_s14 + $0x190] sm:$0xff] }
  0x43   : > { %1578 = vmatpush.msra.mxu3 %v260_v6  ;;  %1589 = vmatpush.msra.mxu2 %v256_v13  ;;  %v2253_v40 = vld [vmem:[%s2116_s14 + $0x180] sm:$0xff]  ;;  %v2276_v42 = vld [vmem:[%s2116_s14 + $0x1b0] sm:$0xff] }
  0x44   : > { %272 = vmatpush.msra.mxu0 %v255_v14  ;;  %1591 = vmatpush.msra.mxu1 %v255_v14  ;;  %3081 = vst [vmem:[#allocation11_spill] sm:$0xff] %v2253_v40  ;;  %v2281_v43 = vld [vmem:[%s2116_s14 + $0x1c0] sm:$0xff]  ;;  %v2300_v46 = vld [vmem:[%s2116_s14 + $0x1f0] sm:$0xff] }
  0x45   : > { %682 = vrot.lane.b32.xlu0 %v2157_v15, %s1995_s20  ;;  %678 = vrot.lane.b32.xlu2 %v2160_v16, %s1995_s20  ;;  %3082 = vst [vmem:[#allocation12_spill] sm:$0xff] %v2276_v42  ;;  %v2284_v44 = vld [vmem:[%s2116_s14 + $0x1a0] sm:$0xff]  ;;  %v2303_v47 = vld [vmem:[%s2116_s14 + $0x1d0] sm:$0xff] }
  0x46   : > { %1581 = vmatpush.msra.mxu3 %v259_v7  ;;  %1592 = vmatpush.msra.mxu2 %v255_v14  ;;  %v2295_v45 = vld [vmem:[%s2116_s14 + $0x1e0] sm:$0xff] }
  0x47   : > { %273 = vmatpush.msra.mxu0 %v254_v17  ;;  %1594 = vmatpush.msra.mxu1 %v254_v17 }
  0x48   : > { %1584 = vmatpush.msra.mxu3 %v258_v10  ;;  %1595 = vmatpush.msra.mxu2 %v254_v17 }
  0x49   : > { %274 = vmatpush.msra.mxu0 %v253_v18  ;;  %1597 = vmatpush.msra.mxu1 %v253_v18 }
  0x4a   : > { %1587 = vmatpush.msra.mxu3 %v257_v11  ;;  %1598 = vmatpush.msra.mxu2 %v253_v18 }
  0x4b   : > { %275 = vmatpush.msra.mxu0 %v252_v19  ;;  %1600 = vmatpush.msra.mxu1 %v252_v19 }
  0x4c   : > { %686 = vrot.lane.b32.xlu1 %v2167_v20, %s1995_s20  ;;  %1590 = vmatpush.msra.mxu3 %v256_v13 }
  0x4d   : > { %1601 = vmatpush.msra.mxu2 %v252_v19  ;;  %276 = vmatpush.msra.mxu0 %v251_v21 }
  0x4e   : > { %1603 = vmatpush.msra.mxu1 %v251_v21  ;;  %688 = vrot.lane.b32.xlu0 %v2170_v22, %s1995_s20 }
  0x4f   : > { %684 = vrot.lane.b32.xlu2 %v2175_v23, %s1995_s20  ;;  %1593 = vmatpush.msra.mxu3 %v255_v14 }
  0x50   : > { %1604 = vmatpush.msra.mxu2 %v251_v21  ;;  %277 = vmatpush.msra.mxu0 %v250_v24 }
  0x51   : > { %1606 = vmatpush.msra.mxu1 %v250_v24  ;;  %1596 = vmatpush.msra.mxu3 %v254_v17 }
  0x52   : > { %1607 = vmatpush.msra.mxu2 %v250_v24  ;;  %278 = vmatpush.msra.mxu0 %v249_v25 }
  0x53   : > { %1609 = vmatpush.msra.mxu1 %v249_v25  ;;  %1599 = vmatpush.msra.mxu3 %v253_v18 }
  0x54   : > { %1610 = vmatpush.msra.mxu2 %v249_v25  ;;  %279 = vmatpush.msra.mxu0 %v248_v26 }
  0x55   : > { %1612 = vmatpush.msra.mxu1 %v248_v26  ;;  %692 = vrot.lane.b32.xlu1 %v2182_v27, %s1995_s20 }
  0x56   : > { %310 = vmatmul.f32.vlgmr.msra.gmra.mxu1 %v2170_v22  ;;  %280 = vmatmul.f32.vlgmr.msra.gmra.mxu0 %v2130_v2 }
  0x57   : > { %1602 = vmatpush.msra.mxu3 %v252_v19  ;;  %1613 = vmatpush.msra.mxu2 %v248_v26  ;;  %v229_v19 = vld [vmem:[%s2116_s14 + $0x168] sm:$0xff] }
  0x58   : > { %694 = vrot.lane.b32.xlu0 %v2187_v28, %s1995_s20  ;;  %690 = vrot.lane.b32.xlu2 %v2190_v29, %s1995_s20 }
  0x59   : > { %328 = vmatmul.f32.vlgmr.msra.gmra.mxu2 %v2195_v30  ;;  %1605 = vmatpush.msra.mxu3 %v251_v21 }
  0x5b   : > { %1608 = vmatpush.msra.mxu3 %v250_v24 }
  0x5d   : > { %1611 = vmatpush.msra.mxu3 %v249_v25  ;;  %698 = vrot.lane.b32.xlu1 %v2203_v31, %s1995_s20 }
  0x5e   : > { %313 = vmatmul.f32.gmra.mxu1 %v2190_v29  ;;  %283 = vmatmul.f32.gmra.mxu0 %v2127_v1 }
  0x5f   : > { %1614 = vmatpush.msra.mxu3 %v248_v26 }
  0x60   : > { %700 = vrot.lane.b32.xlu0 %v2195_v30, %s1995_s20  ;;  %696 = vrot.lane.b32.xlu2 %v2208_v32, %s1995_s20 }
  0x61   : > { %331 = vmatmul.f32.gmra.mxu2 %v2213_v33  ;;  %346 = vmatmul.f32.vlgmr.msra.gmra.mxu3 %v2216_v34 }
  0x65   : > { %704 = vrot.lane.b32.xlu1 %v2225_v35, %s1995_s20 }
  0x66   : > { %286 = vmatmul.f32.gmra.mxu0 %v2137_v5  ;;  %316 = vmatmul.f32.gmra.mxu1 %v2182_v27 }
  0x68   : > { %706 = vrot.lane.b32.xlu0 %v2230_v36, %s1995_s20  ;;  %702 = vrot.lane.b32.xlu2 %v2213_v33, %s1995_s20 }
  0x69   : > { %349 = vmatmul.f32.gmra.mxu3 %v2235_v37  ;;  %334 = vmatmul.f32.gmra.mxu2 %v2225_v35 }
  0x6d   : > { %710 = vrot.lane.b32.xlu1 %v2244_v38, %s1995_s20 }
  0x6e   : > { %289 = vmatmul.f32.gmra.mxu0 %v2145_v9  ;;  %319 = vmatmul.f32.gmra.mxu1 %v2187_v28 }
  0x70   : > { %712 = vrot.lane.b32.xlu0 %v2216_v34, %s1995_s20  ;;  %708 = vrot.lane.b32.xlu2 %v2249_v39, %s1995_s20 }
  0x71   : > { %352 = vmatmul.f32.gmra.mxu3 %v2253_v40  ;;  %337 = vmatmul.f32.gmra.mxu2 %v2230_v36 }
  0x75   : > { %716 = vrot.lane.b32.xlu1 %v2253_v40, %s1995_s20 }
  0x76   : > { %292 = vmatmul.f32.gmra.mxu0 %v2142_v8  ;;  %322 = vmatmul.f32.gmra.mxu1 %v2208_v32 }
  0x78   : > { %718 = vrot.lane.b32.xlu0 %v2265_v41, %s1995_s20  ;;  %714 = vrot.lane.b32.xlu2 %v2235_v37, %s1995_s20 }
  0x79   : > { %340 = vmatmul.f32.gmra.mxu2 %v2249_v39  ;;  %355 = vmatmul.f32.gmra.mxu3 %v2265_v41 }
  0x7d   : > { %722 = vrot.lane.b32.xlu1 %v2276_v42, %s1995_s20 }
  0x7e   : > { %295 = vmatmul.f32.gmra.mxu0 %v2160_v16  ;;  %325 = vmatmul.f32.gmra.mxu1 %v2203_v31 }
  0x80   : > { %724 = vrot.lane.b32.xlu0 %v2281_v43, %s1995_s20  ;;  %720 = vrot.lane.b32.xlu2 %v2284_v44, %s1995_s20 }
  0x81   : > { %358 = vmatmul.f32.gmra.mxu3 %v2284_v44  ;;  %343 = vmatmul.f32.gmra.mxu2 %v2244_v38 }
  0x85   : > { %728 = vrot.lane.b32.xlu1 %v2295_v45, %s1995_s20 }
  0x86   : > { %298 = vmatmul.f32.gmra.mxu0 %v2152_v12 }
  0x88   : > { %730 = vrot.lane.b32.xlu0 %v2300_v46, %s1995_s20  ;;  %726 = vrot.lane.b32.xlu2 %v2303_v47, %s1995_s20 }
  0x89   : > { %361 = vmatmul.f32.gmra.mxu3 %v2276_v42 }
  0x8d   : > { %798 = vrot.lane.b32.xlu1 %v2127_v1, %s1996_s15  ;;  %v187_v1 = vld [vmem:[%s2116_s14 + $0x18] sm:$0xff] }
  0x8e   : > { %301 = vmatmul.f32.gmra.mxu0 %v2157_v15  ;;  %v2352_v49 = vpop.permute.xlu2 %668 }
  0x90   : > { %800 = vrot.lane.b32.xlu0 %v2137_v5, %s1996_s15  ;;  %796 = vrot.lane.b32.xlu2 %v2130_v2, %s1996_s15  ;;  %v217_v5 = vld [vmem:[%s2116_s14 + $0x108] sm:$0xff] }
  0x91   : > { %364 = vmatmul.f32.gmra.mxu3 %v2281_v43 }
  0x95   : > { %804 = vrot.lane.b32.xlu1 %v2142_v8, %s1996_s15 }
  0x96   : > { %304 = vmatmul.f32.gmra.mxu0 %v2175_v23 }
  0x97   : > { %v2360_v58 = vpop.permute.xlu2 %674 }
  0x98   : > { %806 = vrot.lane.b32.xlu0 %v2160_v16, %s1996_s15  ;;  %802 = vrot.lane.b32.xlu2 %v2145_v9, %s1996_s15 }
  0x99   : > { %367 = vmatmul.f32.gmra.mxu3 %v2303_v47 }
  0x9d   : > { %810 = vrot.lane.b32.xlu1 %v2157_v15, %s1996_s15  ;;  %v209_v15 = vld [vmem:[%s2116_s14 + $0xc8] sm:$0xff] }
  0x9e   : > { %307 = vmatmul.f32.gmra.mxu0 %v2167_v20 }
  0x9f   : > { %v2369_v10 = vpop.permute.xlu2 %678 }
  0xa0   : > { %812 = vrot.lane.b32.xlu0 %v2175_v23, %s1996_s15  ;;  %808 = vrot.lane.b32.xlu2 %v2152_v12, %s1996_s15 }
  0xa1   : > { %370 = vmatmul.f32.gmra.mxu3 %v2295_v45 }
  0xa5   : > { %816 = vrot.lane.b32.xlu1 %v2170_v22, %s1996_s15 }
  0xa6   : > { %v2358_v55 = vpop.permute.xlu0 %670 }
  0xa8   : > { %818 = vrot.lane.b32.xlu0 %v2190_v29, %s1996_s15  ;;  %814 = vrot.lane.b32.xlu2 %v2167_v20, %s1996_s15  ;;  %v2350_v48 = vpop.permute.xlu1 %672  ;;  %v219_v20 = vld [vmem:[%s2116_s14 + $0x118] sm:$0xff] }
  0xa9   : > { %373 = vmatmul.f32.gmra.mxu3 %v2300_v46 }
  0xad   : > { %822 = vrot.lane.b32.xlu1 %v2187_v28, %s1996_s15 }
  0xae   : > { %v2367_v7 = vpop.permute.xlu0 %676 }
  0xaf   : > { %3083 = vst [vmem:[#allocation13_spill] sm:$0xff] %v2367_v7 }
  0xb0   : > { %824 = vrot.lane.b32.xlu0 %v2208_v32, %s1996_s15  ;;  %820 = vrot.lane.b32.xlu2 %v2182_v27, %s1996_s15  ;;  %v2378_v27 = vpop.permute.xlu2 %684  ;;  %v189_v32 = vld [vmem:[%s2116_s14 + $0x28] sm:$0xff] }
  0xb3   : > { %v2354_v50 = vpop.permute.xlu1 %680 }
  0xb7   : > { %v2376_v26 = vpop.permute.xlu0 %682 }
  0xb8   : > { %826 = vrot.lane.b32.xlu2 %v2203_v31, %s1996_s15 }
  0xbe   : > { %v2362_v59 = vpop.permute.xlu1 %686 }
  0xc7   : > { %v2371_v12 = vpop.permute.xlu1 %692 }
  0xcf   : > { %v2380_v31 = vpop.permute.xlu1 %698 }
  0xd3   : > { %v311_v51 = vpop.f32.mrf.mxu1  ;;  %v281_v52 = vpop.f32.mrf.mxu0 }
  0xd4   : > { %v387_v56 = vmax.f32 %v311_v51, 0.0  ;;  %v377_v57 = vmax.f32 %v281_v52, 0.0 }
  0xd6   : > { %v419_v60 = vmul.f32 %v387_v56, %v205_v53  ;;  %v409_v61 = vmul.f32 %v377_v57, %v185_v54  ;;  %v231_v56 = vld [vmem:[%s2116_s14 + $0x178] sm:$0xff]  ;;  %v221_v57 = vld [vmem:[%s2116_s14 + $0x128] sm:$0xff] }
  0xd8   : > { %461 = vadd.xlane.f32.xlu1 %v419_v60 }
  0xda   : > { %441 = vadd.xlane.f32.xlu0 %v409_v61 }
  0xdb   : > { %v314_v62 = vpop.f32.mrf.mxu1  ;;  %v284_v63 = vpop.f32.mrf.mxu0 }
  0xdc   : > { %v388_v2 = vmax.f32 %v314_v62, 0.0  ;;  %v329_v3 = vpop.f32.mrf.mxu2  ;;  %v378_v4 = vmax.f32 %v284_v63, 0.0 }
  0xdd   : > { %v393_v6 = vmax.f32 %v329_v3, 0.0  ;;  %v191_v3 = vld [vmem:[%s2116_s14 + $0x38] sm:$0xff] }
  0xde   : > { %v420_v8 = vmul.f32 %v388_v2, %v207_v0  ;;  %v410_v9 = vmul.f32 %v378_v4, %v187_v1  ;;  %v2385_v2 = vpop.permute.xlu0 %688  ;;  %v2388_v4 = vpop.permute.xlu2 %690 }
  0xdf   : > { %v425_v11 = vmul.f32 %v393_v6, %v217_v5  ;;  %v193_v6 = vld [vmem:[%s2116_s14 + $0x48] sm:$0xff] }
  0xe1   : > { %473 = vadd.xlane.f32.xlu1 %v425_v11  ;;  %463 = vadd.xlane.f32.xlu2 %v420_v8  ;;  %v233_v11 = vld [vmem:[%s2116_s14 + $0x188] sm:$0xff] }
  0xe2   : > { %443 = vadd.xlane.f32.xlu0 %v410_v9 }
  0xe3   : > { %v287_v13 = vpop.f32.mrf.mxu0  ;;  %v317_v14 = vpop.f32.mrf.mxu1 }
  0xe4   : > { %v332_v16 = vpop.f32.mrf.mxu2  ;;  %v347_v17 = vpop.f32.mrf.mxu3  ;;  %v389_v18 = vmax.f32 %v317_v14, 0.0  ;;  %v379_v28 = vmax.f32 %v287_v13, 0.0 }
  0xe5   : > { %v394_v21 = vmax.f32 %v332_v16, 0.0  ;;  %v399_v22 = vmax.f32 %v347_v17, 0.0  ;;  %v2392_v16 = vpop.permute.xlu1 %704 }
  0xe6   : > { %v421_v23 = vmul.f32 %v389_v18, %v209_v15  ;;  %v411_v62 = vmul.f32 %v379_v28, %v189_v32  ;;  %3084 = vst [vmem:[#allocation14_spill] sm:$0xff] %v2392_v16  ;;  %v2398_v28 = vpop.permute.xlu2 %696 }
  0xe7   : > { %v431_v24 = vmul.f32 %v399_v22, %v229_v19  ;;  %v426_v25 = vmul.f32 %v394_v21, %v219_v20  ;;  %v211_v22 = vld [vmem:[%s2116_s14 + $0xd8] sm:$0xff] }
  0xe9   : > { %485 = vadd.xlane.f32.xlu1 %v431_v24  ;;  %475 = vadd.xlane.f32.xlu2 %v426_v25  ;;  %v2396_v24 = vpop.permute.xlu0 %694 }
  0xea   : > { %465 = vadd.xlane.f32.xlu0 %v421_v23  ;;  %v213_v23 = vld [vmem:[%s2116_s14 + $0xe8] sm:$0xff] }
  0xeb   : > { %v290_v51 = vpop.f32.mrf.mxu0  ;;  %v320_v52 = vpop.f32.mrf.mxu1 }
  0xec   : > { %v350_v53 = vpop.f32.mrf.mxu3  ;;  %v335_v54 = vpop.f32.mrf.mxu2  ;;  %v380_v1 = vmax.f32 %v290_v51, 0.0  ;;  %v390_v20 = vmax.f32 %v320_v52, 0.0 }
  0xed   : > { %v400_v60 = vmax.f32 %v350_v53, 0.0  ;;  %v395_v61 = vmax.f32 %v335_v54, 0.0  ;;  %v2400_v54 = vpop.permute.xlu1 %710 }
  0xee   : > { %v412_v15 = vmul.f32 %v380_v1, %v191_v3  ;;  %v422_v32 = vmul.f32 %v390_v20, %v211_v22  ;;  %v2406_v1 = vpop.permute.xlu2 %702 }
  0xef   : > { %v432_v63 = vmul.f32 %v400_v60, %v231_v56  ;;  %v427_v0 = vmul.f32 %v395_v61, %v221_v57  ;;  %v223_v57 = vld [vmem:[%s2116_s14 + $0x138] sm:$0xff]  ;;  %v225_v60 = vld [vmem:[%s2116_s14 + $0x148] sm:$0xff] }
  0xf1   : > { %487 = vadd.xlane.f32.xlu2 %v432_v63  ;;  %445 = vadd.xlane.f32.xlu1 %v411_v62  ;;  %v2404_v63 = vpop.permute.xlu0 %700 }
  0xf2   : > { %477 = vadd.xlane.f32.xlu0 %v427_v0  ;;  %3085 = vst [vmem:[#allocation15_spill] sm:$0xff] %v2404_v63 }
  0xf3   : > { %v293_v5 = vpop.f32.mrf.mxu0  ;;  %v323_v18 = vpop.f32.mrf.mxu1 }
  0xf4   : > { %v381_v8 = vmax.f32 %v293_v5, 0.0  ;;  %v353_v9 = vpop.f32.mrf.mxu3  ;;  %v338_v13 = vpop.f32.mrf.mxu2  ;;  %v391_v21 = vmax.f32 %v323_v18, 0.0 }
  0xf5   : > { %v401_v14 = vmax.f32 %v353_v9, 0.0  ;;  %v396_v56 = vmax.f32 %v338_v13, 0.0  ;;  %v237_v9 = vld [vmem:[%s2116_s14 + $0x1a8] sm:$0xff] }
  0xf6   : > { %v413_v17 = vmul.f32 %v381_v8, %v193_v6  ;;  %v423_v51 = vmul.f32 %v391_v21, %v213_v23  ;;  %v2408_v6 = vpop.permute.xlu1 %716  ;;  %v235_v8 = vld [vmem:[%s2116_s14 + $0x198] sm:$0xff] }
  0xf7   : > { %v433_v19 = vmul.f32 %v401_v14, %v233_v11  ;;  %v428_v61 = vmul.f32 %v396_v56, %v223_v57 }
  0xf9   : > { %447 = vadd.xlane.f32.xlu1 %v412_v15  ;;  %449 = vadd.xlane.f32.xlu2 %v413_v17  ;;  %v2414_v15 = vpop.permute.xlu0 %706  ;;  %v2416_v17 = vpop.permute.xlu2 %708 }
  0xfa   : > { %489 = vadd.xlane.f32.xlu0 %v433_v19  ;;  %3086 = vst [vmem:[#allocation16_spill] sm:$0xff] %v2414_v15  ;;  %v195_v19 = vld [vmem:[%s2116_s14 + $0x58] sm:$0xff] }
  0xfb   : > { %v296_v14 = vpop.f32.mrf.mxu0 }
  0xfc   : > { %v356_v25 = vpop.f32.mrf.mxu3  ;;  %v341_v53 = vpop.f32.mrf.mxu2  ;;  %v382_v18 = vmax.f32 %v296_v14, 0.0  ;;  %v239_v14 = vld [vmem:[%s2116_s14 + $0x1b8] sm:$0xff] }
  0xfd   : > { %v397_v52 = vmax.f32 %v341_v53, 0.0  ;;  %v402_v3 = vmax.f32 %v356_v25, 0.0  ;;  %v326_v53 = vpop.f32.mrf.mxu1 }
  0xfe   : > { %v2419_v20 = vpop.permute.xlu1 %722  ;;  %v414_v21 = vmul.f32 %v382_v18, %v195_v19  ;;  %v392_v57 = vmax.f32 %v326_v53, 0.0 }
  0xff   : > { %v429_v62 = vmul.f32 %v397_v52, %v225_v60  ;;  %v434_v11 = vmul.f32 %v402_v3, %v235_v8  ;;  %v215_v60 = vld [vmem:[%s2116_s14 + $0xf8] sm:$0xff] }
 0x100   : > { %v227_v8 = vld [vmem:[%s2116_s14 + $0x158] sm:$0xff] }
 0x101   : > { %467 = vadd.xlane.f32.xlu1 %v422_v32  ;;  %469 = vadd.xlane.f32.xlu2 %v423_v51  ;;  %v2421_v22 = vpop.permute.xlu0 %712  ;;  %v2423_v23 = vpop.permute.xlu2 %714 }
 0x104   : > { %v359_v0 = vpop.f32.mrf.mxu3 }
 0x105   : > { %v403_v5 = vmax.f32 %v359_v0, 0.0  ;;  %v344_v0 = vpop.f32.mrf.mxu2 }
 0x106   : > { %v2425_v25 = vpop.permute.xlu1 %728 }
 0x107   : > { %v435_v13 = vmul.f32 %v403_v5, %v237_v9 }
 0x109   : > { %479 = vadd.xlane.f32.xlu1 %v428_v61  ;;  %481 = vadd.xlane.f32.xlu2 %v429_v62  ;;  %v2429_v32 = vpop.permute.xlu2 %720  ;;  %v424_v62 = vmul.f32 %v392_v57, %v215_v60 }
 0x10e   : > { %830 = vrot.lane.b32.xlu0 %v2213_v33, %s1996_s15  ;;  %v2427_v33 = vpop.permute.xlu0 %718  ;;  %v2431_v51 = vpop.permute.xlu1 %798 }
 0x111   : > { %491 = vadd.xlane.f32.xlu1 %v434_v11  ;;  %493 = vadd.xlane.f32.xlu2 %v435_v13  ;;  %v2437_v52 = vpop.permute.xlu2 %726  ;;  %v362_v11 = vpop.f32.mrf.mxu3 }
 0x112   : > { %v404_v13 = vmax.f32 %v362_v11, 0.0 }
 0x114   : > { %v436_v19 = vmul.f32 %v404_v13, %v239_v14  ;;  %v243_v14 = vld [vmem:[%s2116_s14 + $0x1d8] sm:$0xff] }
 0x116   : > { %v2435_v56 = vpop.permute.xlu0 %724  ;;  %v2442_v61 = vpop.permute.xlu1 %804 }
 0x117   : > { %3087 = vst [vmem:[#allocation17_spill] sm:$0xff] %v2442_v61 }
 0x119   : > { %451 = vadd.xlane.f32.xlu2 %v414_v21  ;;  %v2448_v5 = vpop.permute.xlu2 %796  ;;  %v299_v21 = vpop.f32.mrf.mxu0 }
 0x11a   : > { %3088 = vst [vmem:[#allocation18_spill] sm:$0xff] %v2448_v5  ;;  %v365_v53 = vpop.f32.mrf.mxu3  ;;  %v383_v60 = vmax.f32 %v299_v21, 0.0 }
 0x11e   : > { %v2446_v3 = vpop.permute.xlu0 %730  ;;  %v2451_v9 = vpop.permute.xlu1 %810 }
 0x11f   : > { %3089 = vst [vmem:[#allocation19_spill] sm:$0xff] %v2451_v9  ;;  %v405_v9 = vmax.f32 %v365_v53, 0.0 }
 0x122   : > { %v368_v11 = vpop.f32.mrf.mxu3 }
 0x123   : > { %v406_v13 = vmax.f32 %v368_v11, 0.0 }
 0x126   : > { %v2454_v18 = vpop.permute.xlu0 %800  ;;  %v2458_v57 = vpop.permute.xlu1 %816 }
 0x127   : > { %3090 = vst [vmem:[#allocation20_spill] sm:$0xff] %v2454_v18  ;;  %v241_v18 = vld [vmem:[%s2116_s14 + $0x1c8] sm:$0xff] }
 0x128   : > { %3092 = vst [vmem:[#allocation22_spill] sm:$0xff] %v2458_v57  ;;  %v201_v57 = vld [vmem:[%s2116_s14 + $0x88] sm:$0xff] }
 0x12a   : > { %828 = vrot.lane.b32.xlu1 %v2195_v30, %s1996_s15  ;;  %v398_v30 = vmax.f32 %v344_v0, 0.0 }
 0x12e   : > { %v2461_v0 = vpop.permute.xlu0 %806  ;;  %v2465_v61 = vpop.permute.xlu1 %822 }
 0x12f   : > { %3093 = vst [vmem:[#allocation23_spill] sm:$0xff] %v2461_v0 }
 0x130   : > { %3095 = vst [vmem:[#allocation25_spill] sm:$0xff] %v2465_v61 }
 0x131   : > { %832 = vrot.lane.b32.xlu2 %v2225_v35, %s1996_s15  ;;  %v430_v35 = vmul.f32 %v398_v30, %v227_v8 }
 0x132   : > { %834 = vrot.lane.b32.xlu1 %v2230_v36, %s1996_s15  ;;  %v2456_v36 = vpop.permute.xlu2 %802 }
 0x133   : > { %3091 = vst [vmem:[#allocation21_spill] sm:$0xff] %v2456_v36 }
 0x136   : > { %v2469_v36 = vpop.permute.xlu0 %812 }
 0x137   : > { %3096 = vst [vmem:[#allocation26_spill] sm:$0xff] %v2469_v36 }
 0x138   : > { %471 = vadd.xlane.f32.xlu0 %v424_v62  ;;  %v197_v62 = vld [vmem:[%s2116_s14 + $0x68] sm:$0xff] }
 0x139   : > { %v415_v30 = vmul.f32 %v383_v60, %v197_v62  ;;  %v437_v62 = vmul.f32 %v405_v9, %v241_v18 }
 0x13a   : > { %v2463_v8 = vpop.permute.xlu2 %808 }
 0x13b   : > { %3094 = vst [vmem:[#allocation24_spill] sm:$0xff] %v2463_v8 }
 0x13e   : > { %v2477_v7 = vpop.permute.xlu0 %818 }
 0x13f   : > { %3098 = vst [vmem:[#allocation28_spill] sm:$0xff] %v2477_v7 }
 0x140   : > { %483 = vadd.xlane.f32.xlu0 %v430_v35  ;;  %v302_v35 = vpop.f32.mrf.mxu0 }
 0x141   : > { %v384_v63 = vmax.f32 %v302_v35, 0.0 }
 0x142   : > { %v2471_v21 = vpop.permute.xlu2 %814 }
 0x143   : > { %3097 = vst [vmem:[#allocation27_spill] sm:$0xff] %v2471_v21 }
 0x146   : > { %v2485_v9 = vpop.permute.xlu0 %824 }
 0x147   : > { %3100 = vst [vmem:[#allocation30_spill] sm:$0xff] %v2485_v9  ;;  %v203_v9 = vld [vmem:[%s2116_s14 + $0x98] sm:$0xff] }
 0x148   : > { %495 = vadd.xlane.f32.xlu0 %v436_v19  ;;  %v438_v19 = vmul.f32 %v406_v13, %v243_v14  ;;  %v305_v0 = vpop.f32.mrf.mxu0  ;;  %v371_v13 = vpop.f32.mrf.mxu3 }
 0x149   : > { %v385_v8 = vmax.f32 %v305_v0, 0.0  ;;  %v407_v14 = vmax.f32 %v371_v13, 0.0 }
 0x14a   : > { %v2479_v53 = vpop.permute.xlu2 %820 }
 0x14b   : > { %v2473_v60 = vpop.xlane.xlu1 %461  ;;  %v417_v61 = vmul.f32 %v385_v8, %v201_v57  ;;  %3099 = vst [vmem:[#allocation29_spill] sm:$0xff] %v2479_v53 }
 0x14e   : > { %v2491_v57 = vpop.xlane.xlu0 %441 }
 0x150   : > { %453 = vadd.xlane.f32.xlu0 %v415_v30  ;;  %v199_v30 = vld [vmem:[%s2116_s14 + $0x78] sm:$0xff] }
 0x151   : > { %v416_v11 = vmul.f32 %v384_v63, %v199_v30 }
 0x152   : > { %v2487_v18 = vpop.permute.xlu2 %826 }
 0x153   : > { %3101 = vst [vmem:[#allocation31_spill] sm:$0xff] %v2487_v18  ;;  %v3050_v18 = vlaneseq }
 0x154   : > { %v2481_v36 = vpop.xlane.xlu1 %473 }
 0x155   : > { %v2520_v53 = vshrl.u32 %v3050_v18, 7 }
 0x157   : > { %3104 = vst [vmem:[#allocation34_spill] sm:$0xff] %v2520_v53  ;;  %vm603_vm0 = vcmp.lt.s32.totalorder %v2520_v53, 7  ;;  %v3132_v53 = vld [vmem:[#allocation21_spill] sm:$0xff] }
 0x15a   : > { %499 = vadd.xlane.f32.xlu2 %v438_v19  ;;  %v2493_v63 = vpop.xlane.xlu2 %463 }
 0x15c   : > { %497 = vadd.xlane.f32.xlu1 %v437_v62  ;;  %v2489_v0 = vpop.xlane.xlu1 %485  ;;  %v245_v62 = vld [vmem:[%s2116_s14 + $0x1e8] sm:$0xff] }
 0x162   : > { %457 = vadd.xlane.f32.xlu2 %v417_v61  ;;  %v2499_v61 = vpop.xlane.xlu0 %443 }
 0x163   : > { %3102 = vst [vmem:[#allocation32_spill] sm:$0xff] %v2499_v61  ;;  %v570_v15 = vrot.slane %v2499_v61, 1 }
 0x164   : > { %836 = vrot.lane.b32.xlu0 %v2249_v39, %s1996_s15  ;;  %455 = vadd.xlane.f32.xlu1 %v416_v11  ;;  %v2495_v8 = vpop.xlane.xlu1 %445  ;;  %v2503_v39 = vpop.xlane.xlu2 %475 }
 0x165   : > { %v308_v11 = vpop.f32.mrf.mxu0  ;;  %v3051_v13 = vrot.slane %v2495_v8, 1 }
 0x166   : > { %v386_v21 = vmax.f32 %v308_v11, 0.0  ;;  %v374_v11 = vpop.f32.mrf.mxu3 }
 0x168   : > { %v418_v16 = vmul.f32 %v386_v21, %v203_v9 }
 0x16a   : > { %v2509_v19 = vpop.xlane.xlu0 %465 }
 0x16b   : > { %3103 = vst [vmem:[#allocation33_spill] sm:$0xff] %v2509_v19  ;;  %v581_v21 = vrot.slane %v2509_v19, 1 }
 0x16c   : > { %v2505_v35 = vpop.xlane.xlu1 %447  ;;  %v2512_v30 = vpop.xlane.xlu2 %487 }
 0x172   : > { %v2523_v7 = vpop.xlane.xlu0 %477 }
 0x173   : > { %3105 = vst [vmem:[#allocation35_spill] sm:$0xff] %v2523_v7 }
 0x17a   : > { %838 = vrot.lane.b32.xlu2 %v2244_v38, %s1996_s15  ;;  %v2514_v38 = vpop.xlane.xlu1 %467  ;;  %v2541_v9 = vpop.xlane.xlu0 %489 }
 0x17b   : > { %v593_v19 = vrot.slane %v2541_v9, 1 }
 0x17d   : > { %840 = vrot.lane.b32.xlu1 %v2216_v34, %s1996_s15  ;;  %v439_v34 = vmul.f32 %v407_v14, %v245_v62  ;;  %v633_v62 = vsel %vm603_vm0, %v570_v15, %v3051_v13 }
 0x182   : > { %844 = vrot.lane.b32.xlu2 %v2253_v40, %s1996_s15  ;;  %v2530_v14 = vpop.xlane.xlu1 %479  ;;  %v247_v40 = vld [vmem:[%s2116_s14 + $0x1f8] sm:$0xff]  ;;  %v2556_v61 = vpop.permute.xlu0 %830 }
 0x183   : > { %3107 = vst [vmem:[#allocation37_spill] sm:$0xff] %v2530_v14 }
 0x18a   : > { %850 = vrot.lane.b32.xlu2 %v2276_v42, %s1996_s15  ;;  %v2528_v42 = vpop.xlane.xlu2 %449 }
 0x18b   : > { %3106 = vst [vmem:[#allocation36_spill] sm:$0xff] %v2528_v42 }
 0x18e   : > { %501 = vadd.xlane.f32.xlu0 %v439_v34  ;;  %v765_v34 = vmul.f32 %v2358_v55, %v633_v62  ;;  %v408_v55 = vmax.f32 %v374_v11, 0.0  ;;  %v3059_v11 = vrot.slane %v2481_v36, 1 }
 0x190   : > { %v440_v5 = vmul.f32 %v408_v55, %v247_v40 }
 0x192   : > { %856 = vrot.lane.b32.xlu2 %v2295_v45, %s1996_s15  ;;  %v3057_v45 = vrot.slane %v2514_v38, 1  ;;  %v2543_v18 = vpop.xlane.xlu2 %469 }
 0x194   : > { %v622_v13 = vsel %vm603_vm0, %v581_v21, %v3057_v45 }
 0x195   : > { %v776_v62 = vmul.f32 %v2371_v12, %v622_v13 }
 0x196   : > { %459 = vadd.xlane.f32.xlu0 %v418_v16  ;;  %v2549_v16 = vpop.xlane.xlu1 %491 }
 0x19a   : > { %958 = vrot.lane.b32.xlu2 %v765_v34, %s1997_s8  ;;  %v3060_v34 = vrot.slane %v2549_v16, 1  ;;  %v2562_v14 = vpop.xlane.xlu2 %481 }
 0x19c   : > { %v610_v45 = vsel %vm603_vm0, %v593_v19, %v3060_v34 }
 0x19d   : > { %v788_v12 = vmul.f32 %v2408_v6, %v610_v45 }
 0x19e   : > { %v2587_v45 = vpop.permute.xlu1 %828 }
 0x1a2   : > { %980 = vrot.lane.b32.xlu2 %v776_v62, %s1997_s8  ;;  %v2577_v62 = vpop.xlane.xlu2 %493 }
 0x1a6   : > { %v2604_v34 = vpop.permute.xlu1 %834 }
 0x1a7   : > { %503 = vadd.xlane.f32.xlu1 %v440_v5  ;;  %3111 = vst [vmem:[#allocation41_spill] sm:$0xff] %v2604_v34 }
 0x1aa   : > { %1004 = vrot.lane.b32.xlu2 %v788_v12, %s1997_s8  ;;  %842 = vrot.lane.b32.xlu0 %v2235_v37, %s1996_s15  ;;  %v3061_v37 = vrot.slane %v2491_v57, 1  ;;  %v2585_v6 = vpop.xlane.xlu2 %451 }
 0x1ab   : > { %v2568_v13 = vpop.xlane.xlu0 %471  ;;  %3108 = vst [vmem:[#allocation38_spill] sm:$0xff] %v2585_v6 }
 0x1ac   : > { %v584_v40 = vrot.slane %v2568_v13, 1 }
 0x1ae   : > { %v619_v55 = vsel %vm603_vm0, %v584_v40, %v3059_v11 }
 0x1af   : > { %v779_v5 = vmul.f32 %v2380_v31, %v619_v55  ;;  %v634_v31 = vsel %vm603_vm0, %v3061_v37, %v570_v15  ;;  %v580_v55 = vrot.slane %v2493_v63, 1 }
 0x1b0   : > { %v764_v12 = vmul.f32 %v2352_v49, %v634_v31  ;;  %v3062_v49 = vrot.slane %v2512_v30, 1 }
 0x1b1   : > { %v623_v11 = vsel %vm603_vm0, %v580_v55, %v581_v21 }
 0x1b2   : > { %986 = vrot.lane.b32.xlu2 %v779_v5, %s1997_s8  ;;  %848 = vrot.lane.b32.xlu0 %v2284_v44, %s1996_s15  ;;  %v611_v21 = vsel %vm603_vm0, %v3062_v49, %v593_v19 }
 0x1b3   : > { %v2598_v5 = vpop.xlane.xlu0 %483 }
 0x1b4   : > { %3109 = vst [vmem:[#allocation39_spill] sm:$0xff] %v2598_v5 }
 0x1ba   : > { %854 = vrot.lane.b32.xlu0 %v2303_v47, %s1996_s15  ;;  %v2600_v47 = vpop.permute.xlu2 %832 }
 0x1bb   : > { %3110 = vst [vmem:[#allocation40_spill] sm:$0xff] %v2600_v47  ;;  %v2611_v15 = vpop.xlane.xlu0 %495  ;;  %v3063_v47 = vrot.slane %v2528_v42, 1 }
 0x1bc   : > { %v596_v37 = vrot.slane %v2611_v15, 1 }
 0x1c0   : > { %846 = vrot.lane.b32.xlu1 %v2265_v41, %s1996_s15  ;;  %v775_v41 = vmul.f32 %v2388_v4, %v623_v11  ;;  %v787_v4 = vmul.f32 %v2423_v23, %v611_v21  ;;  %v579_v11 = vrot.slane %v2473_v60, 1 }
 0x1c2   : > { %956 = vrot.lane.b32.xlu0 %v764_v12, %s1997_s8  ;;  %v624_v34 = vsel %vm603_vm0, %v579_v11, %v580_v55  ;;  %v3112_v55 = vrot.slane %v2495_v8, 1 }
 0x1c3   : > { %v774_v21 = vmul.f32 %v2385_v2, %v624_v34  ;;  %v595_v34 = vrot.slane %v2577_v62, 1 }
 0x1c8   : > { %852 = vrot.lane.b32.xlu1 %v2281_v43, %s1996_s15 }
 0x1ca   : > { %978 = vrot.lane.b32.xlu0 %v775_v41, %s1997_s8  ;;  %v572_v41 = vrot.slane %v2505_v35, 1 }
 0x1cc   : > { %v631_v23 = vsel %vm603_vm0, %v572_v41, %v3063_v47 }
 0x1cd   : > { %v2613_v31 = vpop.xlane.xlu2 %499 }
 0x1cf   : > { %v2619_v12 = vpop.xlane.xlu1 %497 }
 0x1d0   : > { %v597_v43 = vrot.slane %v2619_v12, 1  ;;  %858 = vrot.lane.b32.xlu1 %v2300_v46, %s1996_s15 }
 0x1d2   : > { %1002 = vrot.lane.b32.xlu0 %v787_v4, %s1997_s8  ;;  %v607_v19 = vsel %vm603_vm0, %v596_v37, %v597_v43  ;;  %v767_v4 = vmul.f32 %v2360_v58, %v631_v23  ;;  %v3113_v23 = vrot.slane %v2514_v38, 1 }
 0x1d3   : > { %v791_v49 = vmul.f32 %v2419_v20, %v607_v19  ;;  %v583_v20 = vrot.slane %v2543_v18, 1 }
 0x1d5   : > { %1010 = vrot.lane.b32.xlu2 %v791_v49, %s1997_s8  ;;  %v2636_v46 = vpop.xlane.xlu2 %457  ;;  %v632_v49 = vsel %vm603_vm0, %v3112_v55, %v572_v41  ;;  %v620_v47 = vsel %vm603_vm0, %v583_v20, %v584_v40  ;;  %v621_v41 = vsel %vm603_vm0, %v3113_v23, %v583_v20  ;;  %v608_v40 = vsel %vm603_vm0, %v595_v34, %v596_v37 }
 0x1d6   : > { %v766_v2 = vmul.f32 %v2350_v48, %v632_v49  ;;  %v778_v58 = vmul.f32 %v2398_v28, %v620_v47  ;;  %v777_v48 = vmul.f32 %v2396_v24, %v621_v41  ;;  %v790_v28 = vmul.f32 %v2429_v32, %v608_v40  ;;  %v1830_v49 = vld [vmem:[%s2116_s14 + $0x10] sm:$0xff]  ;;  %v2682_v24 = vpop.xlane.xlu0 %453 }
 0x1d7   : > { %v3114_v47 = vrot.slane %v2549_v16, 1  ;;  %1766 = vlog2.f32 %v1830_v49  ;;  %v598_v37 = vrot.slane %v2613_v31, 1  ;;  %v2705_v49 = vpop.xlane.xlu1 %455 }
 0x1d8   : > { %976 = vrot.lane.b32.xlu1 %v774_v21, %s1997_s8 }
 0x1d9   : > { %v606_v32 = vsel %vm603_vm0, %v597_v43, %v598_v37 }
 0x1da   : > { %962 = vrot.lane.b32.xlu0 %v767_v4, %s1997_s8  ;;  %v609_v4 = vsel %vm603_vm0, %v3114_v47, %v595_v34  ;;  %v792_v34 = vmul.f32 %v2435_v56, %v606_v32 }
 0x1db   : > { %v789_v20 = vmul.f32 %v2427_v33, %v609_v4 }
 0x1dd   : > { %v2651_v19 = vpop.permute.xlu2 %838 }
 0x1de   : > { %v2690_v33 = vpop.permute.xlu0 %836 }
 0x1e0   : > { %960 = vrot.lane.b32.xlu1 %v766_v2, %s1997_s8  ;;  %v1767_v2 = vpop.eup %1766 }
 0x1e1   : > { %v508_v23 = vmul.f32 0.6931472, %v1767_v2 }
 0x1e2   : > { %984 = vrot.lane.b32.xlu0 %v778_v58, %s1997_s8 }
 0x1e3   : > { %v893_v41 = vadd.f32 %v2431_v51, %v508_v23  ;;  %v589_v23 = vrot.slane %v2562_v14, 1 }
 0x1e5   : > { %v2664_v21 = vpop.permute.xlu2 %844 }
 0x1e8   : > { %982 = vrot.lane.b32.xlu1 %v777_v48, %s1997_s8 }
 0x1ea   : > { %1008 = vrot.lane.b32.xlu0 %v790_v28, %s1997_s8 }
 0x1ed   : > { %v2676_v55 = vpop.permute.xlu2 %850 }
 0x1f0   : > { %1006 = vrot.lane.b32.xlu1 %v789_v20, %s1997_s8  ;;  %v577_v20 = vrot.slane %v2636_v46, 1 }
 0x1f5   : > { %v2686_v58 = vpop.permute.xlu2 %856 }
 0x1f8   : > { %1012 = vrot.lane.b32.xlu1 %v792_v34, %s1997_s8  ;;  %v590_v34 = vrot.slane %v2598_v5, 1  ;;  %v586_v5 = vrot.slane %v2503_v39, 1 }
 0x1fd   : > { %v959_v40 = vpop.permute.xlu2 %958 }
 0x1fe   : > { %v2693_v48 = vadd.f32 %v959_v40, %v893_v41  ;;  %v2718_v41 = vpop.permute.xlu1 %840  ;;  %v614_v40 = vsel %vm603_vm0, %v589_v23, %v590_v34 }
 0x201   : > { %v2695_v28 = vpop.xlane.xlu0 %501 }
 0x202   : > { %v599_v47 = vrot.slane %v2695_v28, 1 }
 0x204   : > { %v605_v43 = vsel %vm603_vm0, %v598_v37, %v599_v47 }
 0x205   : > { %v793_v4 = vmul.f32 %v2437_v52, %v605_v43  ;;  %v784_v43 = vmul.f32 %v2416_v17, %v614_v40  ;;  %v587_v40 = vrot.slane %v2523_v7, 1  ;;  %v1840_v7 = vld [vmem:[%s2116_s14 + $0x90] sm:$0xff] }
 0x207   : > { %1014 = vrot.lane.b32.xlu0 %v793_v4, %s1997_s8 }
 0x209   : > { %v2702_v56 = vpop.xlane.xlu0 %459 }
 0x20a   : > { %v578_v51 = vrot.slane %v2702_v56, 1 }
 0x20c   : > { %v626_v32 = vsel %vm603_vm0, %v577_v20, %v578_v51  ;;  %v625_v2 = vsel %vm603_vm0, %v578_v51, %v579_v11  ;;  %v575_v11 = vrot.slane %v2682_v24, 1 }
 0x20d   : > { %v772_v37 = vmul.f32 %v2378_v27, %v626_v32  ;;  %v773_v52 = vmul.f32 %v2362_v59, %v625_v2  ;;  %v574_v59 = vrot.slane %v2585_v6, 1 }
 0x20f   : > { %972 = vrot.lane.b32.xlu0 %v772_v37, %s1997_s8  ;;  %974 = vrot.lane.b32.xlu2 %v773_v52, %s1997_s8  ;;  %v629_v4 = vsel %vm603_vm0, %v574_v59, %v575_v11  ;;  %v3115_v37 = vrot.slane %v2491_v57, 1 }
 0x210   : > { %v769_v2 = vmul.f32 %v2369_v10, %v629_v4  ;;  %v591_v10 = vrot.slane %v2489_v0, 1  ;;  %v3116_v4 = vrot.slane %v2512_v30, 1 }
 0x217   : > { %996 = vrot.lane.b32.xlu0 %v784_v43, %s1997_s8 }
 0x21a   : > { %v2726_v27 = vpop.xlane.xlu1 %503 }
 0x21b   : > { %v600_v51 = vrot.slane %v2726_v27, 1 }
 0x21c   : > { %v2731_v32 = vpop.permute.xlu0 %842 }
 0x21d   : > { %v604_v17 = vsel %vm603_vm0, %v599_v47, %v600_v51  ;;  %v635_v52 = vsel %vm603_vm0, %v600_v51, %v3115_v37  ;;  %v617_v47 = vsel %vm603_vm0, %v586_v5, %v587_v40 }
 0x21e   : > { %v794_v43 = vmul.f32 %v2425_v25, %v604_v17  ;;  %v795_v6 = vmul.f32 %v2446_v3, %v635_v52  ;;  %v612_v25 = vsel %vm603_vm0, %v591_v10, %v3116_v4  ;;  %v613_v3 = vsel %vm603_vm0, %v590_v34, %v591_v10  ;;  %v1831_v17 = vld [vmem:[%s2116_s14] sm:$0xff]  ;;  %v3117_v4 = vld [vmem:[#allocation37_spill] sm:$0xff] }
 0x21f   : > { %966 = vrot.lane.b32.xlu0 %v769_v2, %s1997_s8  ;;  %v781_v2 = vmul.f32 %v2406_v1, %v617_v47  ;;  %1768 = vlog2.f32 %v1831_v17  ;;  %v785_v37 = vmul.f32 %v2400_v54, %v613_v3  ;;  %v576_v52 = vrot.slane %v2705_v49, 1  ;;  %v3118_v3 = vld [vmem:[#allocation18_spill] sm:$0xff] }
 0x220   : > { %1016 = vrot.lane.b32.xlu1 %v794_v43, %s1997_s8  ;;  %1018 = vrot.lane.b32.xlu2 %v795_v6, %s1997_s8  ;;  %v786_v6 = vmul.f32 %v2421_v22, %v612_v25  ;;  %1770 = vlog2.f32 %v2190_v29  ;;  %v588_v25 = vrot.slane %v3117_v4, 1  ;;  %v1841_v4 = vld [vmem:[%s2116_s14 + $0x1c0] sm:$0xff] }
 0x221   : > { %v627_v34 = vsel %vm603_vm0, %v576_v52, %v577_v20  ;;  %v628_v1 = vsel %vm603_vm0, %v575_v11, %v576_v52  ;;  %v3120_v52 = vld [vmem:[#allocation11_spill] sm:$0xff] }
 0x222   : > { %v771_v54 = vmul.f32 %v2376_v26, %v627_v34  ;;  %v770_v22 = vmul.f32 %v2354_v50, %v628_v1  ;;  %v616_v29 = vsel %vm603_vm0, %v587_v40, %v588_v25  ;;  %v3119_v50 = vld [vmem:[#allocation32_spill] sm:$0xff]  ;;  %1772 = vlog2.f32 %v3120_v52 }
 0x223   : > { %v3121_v34 = vld [vmem:[#allocation16_spill] sm:$0xff] }
 0x224   : > { %v2756_v51 = vpop.permute.xlu0 %848 }
 0x225   : > { %v1769_v43 = vpop.eup %1768 }
 0x226   : > { %v506_v47 = vmul.f32 0.6931472, %v1769_v43  ;;  %v1771_v26 = vpop.eup %1770  ;;  %v3122_v43 = vld [vmem:[#allocation14_spill] sm:$0xff] }
 0x227   : > { %990 = vrot.lane.b32.xlu0 %v781_v2, %s1997_s8  ;;  %v615_v2 = vsel %vm603_vm0, %v588_v25, %v589_v23  ;;  %v2791_v23 = vpop.permute.xlu2 %980 }
 0x228   : > { %1000 = vrot.lane.b32.xlu1 %v786_v6, %s1997_s8  ;;  %998 = vrot.lane.b32.xlu2 %v785_v37, %s1997_s8  ;;  %v892_v11 = vadd.f32 %v3118_v3, %v506_v47  ;;  %v1085_v6 = vsub.f32 %v2693_v48, %v3119_v50  ;;  %v783_v1 = vmul.f32 %v3121_v34, %v615_v2  ;;  %v3125_v3 = vld [vmem:[#allocation28_spill] sm:$0xff]  ;;  %v3126_v2 = vrot.slane %v2528_v42, 1  ;;  %v1833_v34 = vld [vmem:[%s2116_s14 + $0x30] sm:$0xff] }
 0x22a   : > { %v2796_v48 = vmul.f32 %v1085_v6, %v3119_v50  ;;  %v1773_v6 = vpop.eup %1772 }
 0x22c   : > { %v2770_v10 = vpop.permute.xlu0 %854  ;;  %3123 = vst [vmem:[#allocation18_spill] sm:$0xff] %v2796_v48 }
 0x230   : > { %970 = vrot.lane.b32.xlu1 %v771_v54, %s1997_s8  ;;  %968 = vrot.lane.b32.xlu2 %v770_v22, %s1997_s8  ;;  %v782_v54 = vmul.f32 %v3122_v43, %v616_v29  ;;  %v528_v22 = vmul.f32 0.6931472, %v1771_v26  ;;  %v630_v29 = vsel %vm603_vm0, %v3126_v2, %v574_v59  ;;  %v3127_v26 = vrot.slane %v2481_v36, 1  ;;  %v3129_v59 = vld [vmem:[#allocation15_spill] sm:$0xff] }
 0x231   : > { %v1998_v2 = vmov 33  }
 0x232   : > { %v2778_v20 = vpop.permute.xlu1 %846  ;;  %1689 = vset.pattern.permute.xlu1 %v1998_v2  ;;  %1683 = vset.pattern.permute.xlu2 %v1998_v2 }
 0x233   : > { %1700 = vset.pattern.permute.xlu0 %v1998_v2 }
 0x234   : > { %v957_v17 = vpop.permute.xlu0 %956 }
 0x235   : > { %v1052_v37 = vadd.f32 %v957_v17, %v892_v11  ;;  %v903_v11 = vadd.f32 %v3125_v3, %v528_v22  ;;  %v618_v17 = vsel %vm603_vm0, %v3127_v26, %v586_v5  ;;  %v554_v22 = vmul.f32 0.6931472, %v1773_v6 }
 0x237   : > { %v1084_v47 = vsub.f32 %v1052_v37, %v2491_v57 }
 0x238   : > { %994 = vrot.lane.b32.xlu1 %v783_v1, %s1997_s8  ;;  %992 = vrot.lane.b32.xlu2 %v782_v54, %s1997_s8  ;;  %v3128_v1 = vld [vmem:[#allocation13_spill] sm:$0xff]  ;;  %v780_v54 = vmul.f32 %v3129_v59, %v618_v17 }
 0x239   : > { %v2799_v40 = vmul.f32 %v1084_v47, %v2491_v57  ;;  %v1832_v57 = vld [vmem:[%s2116_s14 + $0xa0] sm:$0xff]  ;;  %v768_v43 = vmul.f32 %v3128_v1, %v630_v29  ;;  %v1005_v47 = vpop.permute.xlu2 %1004  ;;  %v3131_v1 = vld [vmem:[#allocation22_spill] sm:$0xff] }
 0x23a   : > { %v2801_v25 = vpop.permute.xlu1 %852  ;;  %1774 = vlog2.f32 %v1832_v57  ;;  %v1834_v29 = vld [vmem:[%s2116_s14 + $0x20] sm:$0xff]  ;;  %v3130_v57 = vld [vmem:[#allocation12_spill] sm:$0xff] }
 0x23b   : > { %3124 = vst [vmem:[#allocation32_spill] sm:$0xff] %v2799_v40  ;;  %1776 = vlog2.f32 %v1833_v34 }
 0x23c   : > { %v979_v37 = vpop.permute.xlu0 %978  ;;  %1778 = vlog2.f32 %v1834_v29  ;;  %v1836_v29 = vld [vmem:[%s2116_s14 + $0xd0] sm:$0xff] }
 0x23d   : > { %v2815_v52 = vadd.f32 %v979_v37, %v903_v11  ;;  %v916_v11 = vadd.f32 %v2664_v21, %v554_v22  ;;  %1780 = vlog2.f32 %v3130_v57 }
 0x23f   : > { %v1076_v34 = vadd.f32 %v1005_v47, %v916_v11 }
 0x240   : > { %964 = vrot.lane.b32.xlu1 %v768_v43, %s1997_s8  ;;  %988 = vrot.lane.b32.xlu2 %v780_v54, %s1997_s8  ;;  %v1775_v5 = vpop.eup %1774  ;;  %v1835_v54 = vld [vmem:[%s2116_s14 + $0xc0] sm:$0xff] }
 0x241   : > { %v1777_v26 = vpop.eup %1776  ;;  %v526_v6 = vmul.f32 0.6931472, %v1775_v5  ;;  %1782 = vlog2.f32 %v1835_v54  ;;  %v1108_v22 = vsub.f32 %v1076_v34, %v2541_v9  ;;  %v2834_v40 = vpop.permute.xlu2 %986 }
 0x242   : > { %v2822_v3 = vpop.permute.xlu1 %858  ;;  %v512_v37 = vmul.f32 0.6931472, %v1777_v26  ;;  %v1779_v59 = vpop.eup %1778  ;;  %1784 = vlog2.f32 %v1836_v29  ;;  %v1838_v29 = vld [vmem:[%s2116_s14 + $0x170] sm:$0xff] }
 0x243   : > { %v902_v43 = vadd.f32 %v3131_v1, %v526_v6  ;;  %v1781_v48 = vpop.eup %1780  ;;  %v510_v57 = vmul.f32 0.6931472, %v1779_v59  ;;  %1786 = vlog2.f32 %v2284_v44  ;;  %v3135_v1 = vld [vmem:[#allocation25_spill] sm:$0xff] }
 0x244   : > { %v2826_v17 = vpop.permute.xlu0 %1002  ;;  %v895_v21 = vadd.f32 %v3132_v53, %v512_v37  ;;  %v560_v26 = vmul.f32 0.6931472, %v1781_v48  ;;  %v2841_v53 = vmul.f32 %v1108_v22, %v2541_v9  ;;  %v3133_v37 = vld [vmem:[#allocation20_spill] sm:$0xff]  ;;  %v1837_v22 = vld [vmem:[%s2116_s14 + $0x190] sm:$0xff] }
 0x245   : > { %v894_v34 = vadd.f32 %v3133_v37, %v510_v57  ;;  %1788 = vlog2.f32 %v1837_v22  ;;  %v3134_v57 = vld [vmem:[#allocation29_spill] sm:$0xff] }
 0x246   : > { %v919_v44 = vadd.f32 %v2676_v55, %v560_v26  ;;  %1790 = vlog2.f32 %v1838_v29 }
 0x247   : > { %v1783_v6 = vpop.eup %1782 }
 0x248   : > { %v530_v54 = vmul.f32 0.6931472, %v1783_v6 }
 0x24a   : > { %v977_v50 = vpop.permute.xlu1 %976 }
 0x24b   : > { %v1062_v2 = vadd.f32 %v977_v50, %v902_v43  ;;  %v1785_v43 = vpop.eup %1784 }
 0x24c   : > { %v963_v5 = vpop.permute.xlu0 %962  ;;  %v1787_v9 = vpop.eup %1786 }
 0x24d   : > { %v1094_v47 = vsub.f32 %v1062_v2, %v2473_v60  ;;  %v2837_v11 = vadd.f32 %v963_v5, %v895_v21  ;;  %v1011_v21 = vpop.permute.xlu2 %1010  ;;  %v532_v2 = vmul.f32 0.6931472, %v1785_v43  ;;  %v1839_v5 = vld [vmem:[%s2116_s14 + $0xe0] sm:$0xff]  ;;  %v558_v37 = vmul.f32 0.6931472, %v1787_v9  ;;  %v3136_v9 = vld [vmem:[#allocation33_spill] sm:$0xff] }
 0x24e   : > { %1792 = vlog2.f32 %v1839_v5  ;;  %v1079_v6 = vadd.f32 %v1011_v21, %v919_v44 }
 0x24f   : > { %v2844_v50 = vmul.f32 %v1094_v47, %v2473_v60  ;;  %v904_v47 = vadd.f32 %v3134_v57, %v530_v54  ;;  %v905_v55 = vadd.f32 %v3135_v1, %v532_v2  ;;  %1794 = vlog2.f32 %v1840_v7 }
 0x250   : > { %v918_v43 = vadd.f32 %v2756_v51, %v558_v37  ;;  %v1111_v22 = vsub.f32 %v1079_v6, %v2611_v15  ;;  %1796 = vlog2.f32 %v1841_v4 }
 0x251   : > { %v1064_v26 = vadd.f32 %v2791_v23, %v904_v47 }
 0x252   : > { %v961_v59 = vpop.permute.xlu1 %960  ;;  %v1143_v57 = vmul.f32 %v1111_v22, %v2611_v15  ;;  %v1095_v15 = vsub.f32 %v2815_v52, %v2493_v63 }
 0x253   : > { %v2850_v48 = vadd.f32 %v961_v59, %v894_v34  ;;  %v1789_v34 = vpop.eup %1788  ;;  %v1096_v44 = vsub.f32 %v1064_v26, %v3136_v9 }
 0x254   : > { %v985_v60 = vpop.permute.xlu0 %984  ;;  %v1791_v42 = vpop.eup %1790  ;;  %v556_v21 = vmul.f32 0.6931472, %v1789_v34 }
 0x255   : > { %v1793_v54 = vpop.eup %1792  ;;  %v552_v2 = vmul.f32 0.6931472, %v1791_v42  ;;  %v1128_v6 = vmul.f32 %v1096_v44, %v3136_v9  ;;  %v1842_v9 = vld [vmem:[%s2116_s14 + $0xf0] sm:$0xff] }
 0x256   : > { %v534_v47 = vmul.f32 0.6931472, %v1793_v54  ;;  %v1795_v37 = vpop.eup %1794  ;;  %v917_v4 = vadd.f32 %v2778_v20, %v556_v21  ;;  %1798 = vlog2.f32 %v1842_v9  ;;  %v3138_v21 = vld [vmem:[#allocation27_spill] sm:$0xff] }
 0x257   : > { %v1797_v34 = vpop.eup %1796  ;;  %v524_v22 = vmul.f32 0.6931472, %v1795_v37 }
 0x258   : > { %v562_v54 = vmul.f32 0.6931472, %v1797_v34 }
 0x25a   : > { %v983_v59 = vpop.permute.xlu1 %982 }
 0x25b   : > { %v1065_v29 = vadd.f32 %v983_v59, %v905_v55  ;;  %v915_v59 = vadd.f32 %v2731_v32, %v552_v2  ;;  %v2878_v32 = vmul.f32 %v1095_v15, %v2493_v63 }
 0x25c   : > { %v1009_v5 = vpop.permute.xlu0 %1008  ;;  %v1799_v37 = vpop.eup %1798 }
 0x25d   : > { %v1097_v1 = vsub.f32 %v1065_v29, %v2514_v38  ;;  %v1078_v23 = vadd.f32 %v1009_v5, %v918_v43  ;;  %v3137_v29 = vld [vmem:[#allocation30_spill] sm:$0xff]  ;;  %v536_v34 = vmul.f32 0.6931472, %v1799_v37 }
 0x25e   : > { %v906_v5 = vadd.f32 %v3137_v29, %v534_v47  ;;  %v1843_v47 = vld [vmem:[%s2116_s14 + $0x1d0] sm:$0xff] }
 0x25f   : > { %v1129_v7 = vmul.f32 %v1097_v1, %v2514_v38  ;;  %v1110_v51 = vsub.f32 %v1078_v23, %v2577_v62  ;;  %v901_v1 = vadd.f32 %v3138_v21, %v524_v22  ;;  %v920_v23 = vadd.f32 %v2801_v25, %v562_v54 }
 0x260   : > { %v1066_v44 = vadd.f32 %v985_v60, %v906_v5  ;;  %1800 = vlog2.f32 %v1843_v47 }
 0x261   : > { %v1142_v55 = vmul.f32 %v1110_v51, %v2577_v62  ;;  %v1690_v26 = vpack.i.bf16 %v1129_v7, %v1143_v57  ;;  %v1075_v62 = vadd.f32 %v2826_v17, %v915_v59 }
 0x262   : > { %v1007_v42 = vpop.permute.xlu1 %1006  ;;  %v1098_v63 = vsub.f32 %v1066_v44, %v2543_v18  ;;  %v1846_v44 = vld [vmem:[%s2116_s14 + $0x1f0] sm:$0xff] }
 0x263   : > { %v1077_v38 = vadd.f32 %v1007_v42, %v917_v4  ;;  %1691 = vperm.xlu1 %1689, %v1690_v26   ;;  %v1684_v43 = vpack.i.bf16 %v1128_v6, %v1142_v55  ;;  %v1107_v7 = vsub.f32 %v1075_v62, %v2512_v30 }
 0x264   : > { %v1130_v55 = vmul.f32 %v1098_v63, %v2543_v18  ;;  %v3140_v63 = vld [vmem:[#allocation24_spill] sm:$0xff] }
 0x265   : > { %v1109_v20 = vsub.f32 %v1077_v38, %v2549_v16  ;;  %1685 = vperm.xlu2 %1683, %v1684_v43   ;;  %v1139_v25 = vmul.f32 %v1107_v7, %v2512_v30  ;;  %v3139_v38 = vld [vmem:[#allocation31_spill] sm:$0xff] }
 0x266   : > { %v1801_v42 = vpop.eup %1800  ;;  %v907_v43 = vadd.f32 %v3139_v38, %v536_v34  ;;  %v1850_v34 = vld [vmem:[%s2116_s14 + $0x100] sm:$0xff] }
 0x267   : > { %v2881_v52 = vmul.f32 %v1109_v20, %v2549_v16  ;;  %v564_v22 = vmul.f32 0.6931472, %v1801_v42  ;;  %v1845_v20 = vld [vmem:[%s2116_s14 + $0x60] sm:$0xff] }
 0x268   : > { %v1067_v29 = vadd.f32 %v2834_v40, %v907_v43  ;;  %v1851_v42 = vld [vmem:[%s2116_s14 + $0x160] sm:$0xff] }
 0x269   : > { %v975_v2 = vpop.permute.xlu2 %974  ;;  %v1711_v57 = vpack.i.bf16 %v2878_v32, %v2881_v52  ;;  %v921_v30 = vadd.f32 %v2770_v10, %v564_v22 }
 0x26a   : > { %v1061_v17 = vadd.f32 %v975_v2, %v901_v1  ;;  %v1013_v51 = vpop.permute.xlu1 %1012  ;;  %v1099_v5 = vsub.f32 %v1067_v29, %v2568_v13 }
 0x26b   : > { %v1080_v60 = vadd.f32 %v1013_v51, %v920_v23 }
 0x26c   : > { %v1093_v16 = vsub.f32 %v1061_v17, %v2702_v56  ;;  %v1131_v9 = vmul.f32 %v1099_v5, %v2568_v13  ;;  %v1847_v17 = vld [vmem:[%s2116_s14 + $0x1e0] sm:$0xff] }
 0x26d   : > { %v1112_v6 = vsub.f32 %v1080_v60, %v2619_v12  ;;  %v1848_v13 = vld [vmem:[%s2116_s14 + $0x80] sm:$0xff] }
 0x26e   : > { %v1125_v4 = vmul.f32 %v1093_v16, %v2702_v56 }
 0x26f   : > { %v1144_v26 = vmul.f32 %v1112_v6, %v2619_v12  ;;  %v1844_v12 = vld [vmem:[%s2116_s14 + $0x140] sm:$0xff] }
 0x270   : > { %v1721_v59 = vpack.i.bf16 %v1125_v4, %v1139_v25  ;;  %1802 = vlog2.f32 %v1844_v12  ;;  %v1849_v25 = vld [vmem:[%s2116_s14 + $0x110] sm:$0xff] }
 0x271   : > { %v1695_v15 = vpack.i.bf16 %v1130_v55, %v1144_v26  ;;  %1804 = vlog2.f32 %v1845_v20  ;;  %v3141_v26 = vpack.i.bf16 %v2844_v50, %v2841_v53 }
 0x272   : > { %1806 = vlog2.f32 %v1846_v44 }
 0x273   : > { %1696 = vperm.xlu2 %1683, %v1695_v15   ;;  %1808 = vlog2.f32 %v1847_v17 }
 0x274   : > { %1810 = vlog2.f32 %v1848_v13 }
 0x275   : > { %1812 = vlog2.f32 %v1849_v25 }
 0x276   : > { %v1803_v21 = vpop.eup %1802  ;;  %1814 = vlog2.f32 %v1850_v34 }
 0x277   : > { %v1805_v23 = vpop.eup %1804  ;;  %v546_v7 = vmul.f32 0.6931472, %v1803_v21  ;;  %1816 = vlog2.f32 %v1851_v42 }
 0x278   : > { %v518_v51 = vmul.f32 0.6931472, %v1805_v23  ;;  %v1807_v47 = vpop.eup %1806 }
 0x279   : > { %v1015_v56 = vpop.permute.xlu0 %1014  ;;  %v568_v16 = vmul.f32 0.6931472, %v1807_v47  ;;  %v1809_v6 = vpop.eup %1808 }
 0x27a   : > { %v1081_v18 = vadd.f32 %v1015_v56, %v921_v30  ;;  %v1019_v54 = vpop.permute.xlu2 %1018  ;;  %v898_v60 = vadd.f32 %v3140_v63, %v518_v51  ;;  %v566_v15 = vmul.f32 0.6931472, %v1809_v6  ;;  %v1811_v22 = vpop.eup %1810  ;;  %v1852_v56 = vld [vmem:[%s2116_s14 + $0x150] sm:$0xff] }
 0x27b   : > { %1722 = vperm.xlu2 %1683, %v1721_v59   ;;  %v923_v38 = vadd.f32 %v2822_v3, %v568_v16  ;;  %v1813_v50 = vpop.eup %1812  ;;  %1818 = vlog2.f32 %v1852_v56 }
 0x27c   : > { %v1113_v62 = vsub.f32 %v1081_v18, %v2613_v31  ;;  %v1815_v5 = vpop.eup %1814  ;;  %v522_v18 = vmul.f32 0.6931472, %v1811_v22  ;;  %v922_v12 = vadd.f32 %v2686_v58, %v566_v15  ;;  %v540_v44 = vmul.f32 0.6931472, %v1813_v50  ;;  %v1856_v50 = vld [vmem:[%s2116_s14 + $0x120] sm:$0xff] }
 0x27d   : > { %v1083_v30 = vadd.f32 %v1019_v54, %v923_v38  ;;  %v1817_v3 = vpop.eup %1816  ;;  %v538_v23 = vmul.f32 0.6931472, %v1815_v5  ;;  %v3143_v5 = vld [vmem:[#allocation19_spill] sm:$0xff] }
 0x27e   : > { %v1145_v40 = vmul.f32 %v1113_v62, %v2613_v31  ;;  %v912_v31 = vadd.f32 %v2690_v33, %v546_v7  ;;  %v550_v7 = vmul.f32 0.6931472, %v1817_v3  ;;  %v909_v63 = vadd.f32 %v2556_v61, %v540_v44 }
 0x280   : > { %v1701_v10 = vpack.i.bf16 %v1131_v9, %v1145_v40 }
 0x281   : > { %v973_v1 = vpop.permute.xlu0 %972  ;;  %v1819_v17 = vpop.eup %1818 }
 0x282   : > { %v2906_v2 = vpop.permute.xlu2 %998  ;;  %1702 = vperm.xlu0 %1700, %v1701_v10   ;;  %v3142_v10 = vld [vmem:[#allocation26_spill] sm:$0xff]  ;;  %v548_v16 = vmul.f32 0.6931472, %v1819_v17 }
 0x283   : > { %v900_v21 = vadd.f32 %v3142_v10, %v522_v18 }
 0x285   : > { %v1060_v47 = vadd.f32 %v973_v1, %v900_v21 }
 0x287   : > { %v1092_v61 = vsub.f32 %v1060_v47, %v2636_v46 }
 0x289   : > { %v997_v37 = vpop.permute.xlu0 %996 }
 0x28a   : > { %v1072_v4 = vadd.f32 %v997_v37, %v912_v31  ;;  %v969_v55 = vpop.permute.xlu2 %968  ;;  %1717 = vperm.xlu0 %1700, %v3141_v26   ;;  %v1854_v31 = vld [vmem:[%s2116_s14 + $0x50] sm:$0xff]  ;;  %v914_v37 = vadd.f32 %v2718_v41, %v550_v7 }
 0x28b   : > { %v1058_v59 = vadd.f32 %v969_v55, %v898_v60  ;;  %v908_v60 = vadd.f32 %v2587_v45, %v538_v23  ;;  %v1087_v55 = vsub.f32 %v2837_v11, %v2505_v35  ;;  %v1855_v45 = vld [vmem:[%s2116_s14 + $0x130] sm:$0xff] }
 0x28c   : > { %v1104_v33 = vsub.f32 %v1072_v4, %v2562_v14  ;;  %v3146_v23 = vld [vmem:[#allocation41_spill] sm:$0xff] }
 0x28d   : > { %v1090_v43 = vsub.f32 %v1058_v59, %v2682_v24  ;;  %v1119_v38 = vmul.f32 %v1087_v55, %v2505_v35 }
 0x28e   : > { %v1136_v29 = vmul.f32 %v1104_v33, %v2562_v14  ;;  %v1115_v14 = vsub.f32 %v1083_v30, %v2726_v27  ;;  %v913_v33 = vadd.f32 %v2651_v19, %v548_v16 }
 0x28f   : > { %v1122_v53 = vmul.f32 %v1090_v43, %v2682_v24  ;;  %v1853_v24 = vld [vmem:[%s2116_s14 + $0x70] sm:$0xff] }
 0x290   : > { %1820 = vlog2.f32 %v1853_v24  ;;  %v1147_v51 = vmul.f32 %v1115_v14, %v2726_v27  ;;  %v1086_v27 = vsub.f32 %v2850_v48, %v2495_v8  ;;  %v1073_v30 = vadd.f32 %v2906_v2, %v913_v33 }
 0x291   : > { %v2925_v20 = vpop.permute.xlu0 %966  ;;  %v1736_v62 = vpack.i.bf16 %v1122_v53, %v1136_v29  ;;  %1822 = vlog2.f32 %v1854_v31  ;;  %v1124_v29 = vmul.f32 %v1092_v61, %v2636_v46  ;;  %v3148_v31 = vld [vmem:[#allocation40_spill] sm:$0xff] }
 0x292   : > { %v1017_v9 = vpop.permute.xlu1 %1016  ;;  %v2927_v40 = vpop.permute.xlu2 %992  ;;  %1824 = vlog2.f32 %v1855_v45  ;;  %v1118_v43 = vmul.f32 %v1086_v27, %v2495_v8  ;;  %v3151_v27 = vld [vmem:[#allocation35_spill] sm:$0xff] }
 0x293   : > { %v1082_v54 = vadd.f32 %v1017_v9, %v922_v12  ;;  %1737 = vperm.xlu2 %1683, %v1736_v62   ;;  %1826 = vlog2.f32 %v1856_v50 }
 0x295   : > { %v1114_v58 = vsub.f32 %v1082_v54, %v2695_v28 }
 0x296   : > { %v1821_v4 = vpop.eup %1820 }
 0x297   : > { %v1146_v13 = vmul.f32 %v1114_v58, %v2695_v28  ;;  %v520_v42 = vmul.f32 0.6931472, %v1821_v4  ;;  %v1823_v15 = vpop.eup %1822 }
 0x298   : > { %v516_v12 = vmul.f32 0.6931472, %v1823_v15  ;;  %v1825_v8 = vpop.eup %1824 }
 0x299   : > { %v991_v6 = vpop.permute.xlu0 %990  ;;  %v1706_v25 = vpack.i.bf16 %v1146_v13, %v1147_v51  ;;  %v899_v18 = vadd.f32 %v3143_v5, %v520_v42  ;;  %v544_v14 = vmul.f32 0.6931472, %v1825_v8  ;;  %v1827_v24 = vpop.eup %1826 }
 0x29a   : > { %v1069_v28 = vadd.f32 %v991_v6, %v909_v63  ;;  %v1001_v1 = vpop.permute.xlu1 %1000  ;;  %v989_v26 = vpop.permute.xlu2 %988  ;;  %v542_v58 = vmul.f32 0.6931472, %v1827_v24  ;;  %v3150_v6 = vld [vmem:[#allocation17_spill] sm:$0xff] }
 0x29b   : > { %v1074_v34 = vadd.f32 %v1001_v1, %v914_v37  ;;  %v1068_v59 = vadd.f32 %v989_v26, %v908_v60  ;;  %1707 = vperm.xlu1 %1689, %v1706_v25   ;;  %v911_v7 = vadd.f32 %v3146_v23, %v544_v14  ;;  %v3149_v60 = vld [vmem:[#allocation37_spill] sm:$0xff]  ;;  %v3152_v26 = vld [vmem:[#allocation36_spill] sm:$0xff] }
 0x29c   : > { %v1101_v41 = vsub.f32 %v1069_v28, %v2503_v39  ;;  %v910_v63 = vadd.f32 %v3148_v31, %v542_v58 }
 0x29d   : > { %v1106_v11 = vsub.f32 %v1074_v34, %v2489_v0  ;;  %v1100_v48 = vsub.f32 %v1068_v59, %v2481_v36 }
 0x29e   : > { %v1133_v22 = vmul.f32 %v1101_v41, %v2503_v39  ;;  %v3144_v39 = vld [vmem:[#allocation39_spill] sm:$0xff]  ;;  %v3154_v41 = vld [vmem:[#allocation18_spill] sm:$0xff] }
 0x29f   : > { %v1138_v53 = vmul.f32 %v1106_v11, %v2489_v0  ;;  %v1132_v19 = vmul.f32 %v1100_v48, %v2481_v36  ;;  %v1105_v46 = vsub.f32 %v1073_v30, %v3144_v39  ;;  %v1857_v0 = vld [vmem:[%s2116_s14 + $0x40] sm:$0xff] }
 0x2a0   : > { %v1751_v56 = vpack.i.bf16 %v1119_v38, %v1133_v22  ;;  %1828 = vlog2.f32 %v1857_v0  ;;  %v3145_v36 = vld [vmem:[#allocation23_spill] sm:$0xff] }
 0x2a1   : > { %v1726_v35 = vpack.i.bf16 %v1124_v29, %v1138_v53  ;;  %v1756_v62 = vpack.i.bf16 %v1118_v43, %v1132_v19  ;;  %v897_v2 = vadd.f32 %v3145_v36, %v516_v12  ;;  %v1137_v44 = vmul.f32 %v1105_v46, %v3144_v39 }
 0x2a2   : > { %v971_v3 = vpop.permute.xlu1 %970  ;;  %1752 = vperm.xlu2 %1683, %v1751_v56  }
 0x2a3   : > { %v1059_v9 = vadd.f32 %v971_v3, %v899_v18  ;;  %1712 = vperm.xlu1 %1689, %v1711_v57   ;;  %v1057_v10 = vadd.f32 %v2925_v20, %v897_v2  ;;  %v3147_v57 = vld [vmem:[#allocation38_spill] sm:$0xff] }
 0x2a5   : > { %v1091_v54 = vsub.f32 %v1059_v9, %v2705_v49  ;;  %v1089_v51 = vsub.f32 %v1057_v10, %v3147_v57 }
 0x2a6   : > { %v1829_v32 = vpop.eup %1828 }
 0x2a7   : > { %v1123_v21 = vmul.f32 %v1091_v54, %v2705_v49  ;;  %v514_v13 = vmul.f32 0.6931472, %v1829_v32  ;;  %v1121_v20 = vmul.f32 %v1089_v51, %v3147_v57  ;;  %v1070_v49 = vadd.f32 %v2927_v40, %v910_v63  ;;  %v3153_v40 = vld [vmem:[#allocation32_spill] sm:$0xff]  ;;  %v3157_v57 = vld [vmem:[#allocation34_spill] sm:$0xff] }
 0x2a8   : > { %v3155_v42 = vpack.i.bf16 %v3153_v40, %v3154_v41  ;;  %v3156_v32 = vlaneseq  ;;  %v1166_v51 = vadd.s32 1, %v3157_v57  ;;  %v1148_v63 = vadd.s32 8, %v3157_v57 }
 0x2a9   : > { %v1731_v17 = vpack.i.bf16 %v1123_v21, %v1137_v44  ;;  %v896_v25 = vadd.f32 %v3150_v6, %v514_v13  ;;  %v1102_v28 = vsub.f32 %v1070_v49, %v3151_v27  ;;  %v1154_v13 = vmul.u32 8, %v3157_v57 }
 0x2aa   : > { %v995_v52 = vpop.permute.xlu1 %994  ;;  %v1170_v31 = vmul.u32 8, %v1166_v51 }
 0x2ab   : > { %v1071_v47 = vadd.f32 %v995_v52, %v911_v7  ;;  %1732 = vperm.xlu0 %1700, %v1731_v17   ;;  %1727 = vperm.xlu1 %1689, %v1726_v35   ;;  %v1134_v34 = vmul.f32 %v1102_v28, %v3151_v27  ;;  %v2984_v52 = vand.u32 127, %v3156_v32 }
 0x2ad   : > { %v1103_v16 = vsub.f32 %v1071_v47, %v3149_v60  ;;  %v1153_v47 = vadd.s32 128, %v2984_v52  ;;  %vm1158_vm4 = vcmp.ge.s32.totalorder %v2984_v52, %v1154_v13  ;;  %vm1174_vm5 = vcmp.lt.s32.totalorder %v2984_v52, %v1170_v31 }
 0x2ae   : > { %vm1182_vm8 = vmand %vm1158_vm4, %vm1174_vm5 }
 0x2af   : > { %v1135_v37 = vmul.f32 %v1103_v16, %v3149_v60  ;;  %vm2990_vm1 = vcmp.ge.s32.totalorder %v1153_v47, %v1154_v13  ;;  %vm2994_vm2 = vcmp.lt.s32.totalorder %v1153_v47, %v1170_v31 }
 0x2b0   : > { %vm1183_vm3 = vmand %vm2990_vm1, %vm2994_vm2 }
 0x2b1   : > { %v1741_v4 = vpack.i.bf16 %v1121_v20, %v1135_v37 }
 0x2b2   : > { %v965_v55 = vpop.permute.xlu1 %964 }
 0x2b3   : > { %v1056_v1 = vadd.f32 %v965_v55, %v896_v25  ;;  %1742 = vperm.xlu1 %1689, %v1741_v4   ;;  %v1167_v4 = vadd.s32 1, %v1148_v63 }
 0x2b5   : > { %v1088_v61 = vsub.f32 %v1056_v1, %v3152_v26 }
 0x2b7   : > { %v1120_v59 = vmul.f32 %v1088_v61, %v3152_v26  ;;  %v1155_v26 = vmul.u32 8, %v1148_v63  ;;  %v1171_v61 = vmul.u32 8, %v1167_v4 }
 0x2b9   : > { %v1746_v45 = vpack.i.bf16 %v1120_v59, %v1134_v34  ;;  %v1149_v34 = vadd.s32 16, %v3157_v57  ;;  %vm1161_vm6 = vcmp.ge.s32.totalorder %v1153_v47, %v1155_v26  ;;  %vm1177_vm7 = vcmp.lt.s32.totalorder %v1153_v47, %v1171_v61 }
 0x2ba   : > { %vm1185_vm9 = vmand %vm1161_vm6, %vm1177_vm7  ;;  %vm1160_vm10 = vcmp.ge.s32.totalorder %v2984_v52, %v1155_v26  ;;  %vm1176_vm11 = vcmp.lt.s32.totalorder %v2984_v52, %v1171_v61 }
 0x2bb   : > { %1747 = vperm.xlu0 %1700, %v1746_v45   ;;  %1757 = vperm.xlu1 %1689, %v1756_v62   ;;  %v1999_v45 = vmov 1.0   ;;  %v1168_v41 = vadd.s32 1, %v1149_v34  ;;  %vm1184_vm14 = vmand %vm1160_vm10, %vm1176_vm11 }
 0x2bf   : > { %v1686_v33 = vpop.permute.xlu2 %1685 }
 0x2c0   : > { %v1688_v29 = vunpack.i.h.bf16 %v1686_v33  ;;  %v1687_v3 = vunpack.i.l.bf16 %v1686_v33  ;;  %v1156_v33 = vmul.u32 8, %v1149_v34 }
 0x2c2   : > { %vm1163_vm12 = vcmp.ge.s32.totalorder %v1153_v47, %v1156_v33  ;;  %vm1162_vm0 = vcmp.ge.s32.totalorder %v2984_v52, %v1156_v33 }
 0x2c3   : > { %1762 = vperm.xlu0 %1700, %v3155_v42  }
 0x2cd   : > { %v1697_v11 = vpop.permute.xlu2 %1696 }
 0x2ce   : > { %v1699_v43 = vunpack.i.h.bf16 %v1697_v11  ;;  %v1698_v56 = vunpack.i.l.bf16 %v1697_v11  ;;  %v1172_v11 = vmul.u32 8, %v1168_v41 }
 0x2d0   : > { %vm1179_vm13 = vcmp.lt.s32.totalorder %v1153_v47, %v1172_v11  ;;  %vm1178_vm1 = vcmp.lt.s32.totalorder %v2984_v52, %v1172_v11 }
 0x2d1   : > { %vm1187_vm15 = vmand %vm1163_vm12, %vm1179_vm13 }
 0x2d2   : > { %vm1186_vm4 = vmand %vm1162_vm0, %vm1178_vm1 }
 0x2d5   : > { %v1692_v38 = vpop.permute.xlu1 %1691  ;;  %v1723_v62 = vpop.permute.xlu2 %1722 }
 0x2d6   : > { %v1694_v22 = vunpack.i.h.bf16 %v1692_v38  ;;  %v1693_v35 = vunpack.i.l.bf16 %v1692_v38  ;;  %v1725_v39 = vunpack.i.h.bf16 %v1723_v62  ;;  %v1724_v14 = vunpack.i.l.bf16 %v1723_v62 }
 0x2ed   : > { %v1738_v54 = vpop.permute.xlu2 %1737 }
 0x2ee   : > { %v1740_v10 = vunpack.i.h.bf16 %v1738_v54  ;;  %v1739_v23 = vunpack.i.l.bf16 %v1738_v54 }
 0x2f4   : > { %v1703_v48 = vpop.permute.xlu0 %1702 }
 0x2f5   : > { %v1705_v15 = vunpack.i.h.bf16 %v1703_v48  ;;  %v1704_v50 = vunpack.i.l.bf16 %v1703_v48  ;;  %v1150_v48 = vadd.s32 24, %v3157_v57 }
 0x2f7   : > { %1366 = vmatpush.msrb.mxu1 %v1705_v15  ;;  %v1169_v15 = vadd.s32 1, %v1150_v48  ;;  %v1157_v38 = vmul.u32 8, %v1150_v48 }
 0x2f9   : > { %1367 = vmatpush.msrb.mxu1 %v1699_v43  ;;  %v1173_v43 = vmul.u32 8, %v1169_v15  ;;  %vm1165_vm2 = vcmp.ge.s32.totalorder %v1153_v47, %v1157_v38  ;;  %vm1164_vm6 = vcmp.ge.s32.totalorder %v2984_v52, %v1157_v38 }
 0x2fb   : > { %1368 = vmatpush.msrb.mxu1 %v1694_v22  ;;  %vm1180_vm7 = vcmp.lt.s32.totalorder %v2984_v52, %v1173_v43 }
 0x2fc   : > { %v1718_v5 = vpop.permute.xlu0 %1717  ;;  %v1753_v60 = vpop.permute.xlu2 %1752 }
 0x2fd   : > { %1369 = vmatpush.msrb.mxu1 %v1688_v29  ;;  %v1720_v8 = vunpack.i.h.bf16 %v1718_v5  ;;  %v1719_v9 = vunpack.i.l.bf16 %v1718_v5  ;;  %v1755_v55 = vunpack.i.h.bf16 %v1753_v60  ;;  %v1754_v27 = vunpack.i.l.bf16 %v1753_v60 }
 0x30d   : > { %v1708_v30 = vpop.permute.xlu1 %1707 }
 0x30e   : > { %v1709_v53 = vunpack.i.l.bf16 %v1708_v30  ;;  %v1710_v19 = vunpack.i.h.bf16 %v1708_v30 }
 0x310   : > { %1395 = vmatpush.msrb.mxu2 %v1709_v53 }
 0x312   : > { %1396 = vmatpush.msrb.mxu2 %v1710_v19 }
 0x314   : > { %1397 = vmatpush.msrb.mxu2 %v1704_v50 }
 0x315   : > { %v1713_v18 = vpop.permute.xlu1 %1712 }
 0x316   : > { %1398 = vmatpush.msrb.mxu2 %v1698_v56  ;;  %v1715_v12 = vunpack.i.h.bf16 %v1713_v18  ;;  %v1714_v46 = vunpack.i.l.bf16 %v1713_v18 }
 0x318   : > { %1370 = vmatpush.msrb.mxu1 %v1715_v12  ;;  %1399 = vmatpush.msrb.mxu2 %v1693_v35 }
 0x31a   : > { %1371 = vmatpush.msrb.mxu1 %v1720_v8  ;;  %1400 = vmatpush.msrb.mxu2 %v1687_v3 }
 0x31c   : > { %1372 = vmatpush.msrb.mxu1 %v1725_v39  ;;  %1401 = vmatpush.msrb.mxu2 %v1714_v46 }
 0x31d   : > { %v1728_v0 = vpop.permute.xlu1 %1727  ;;  %v1733_v36 = vpop.permute.xlu0 %1732 }
 0x31e   : > { %1402 = vmatpush.msrb.mxu2 %v1719_v9  ;;  %v1730_v2 = vunpack.i.h.bf16 %v1728_v0  ;;  %v1735_v24 = vunpack.i.h.bf16 %v1733_v36  ;;  %v1729_v44 = vunpack.i.l.bf16 %v1728_v0  ;;  %v1734_v21 = vunpack.i.l.bf16 %v1733_v36 }
 0x320   : > { %1373 = vmatpush.msrb.mxu1 %v1730_v2  ;;  %1403 = vmatpush.msrb.mxu2 %v1724_v14 }
 0x322   : > { %1374 = vmatpush.msrb.mxu1 %v1735_v24  ;;  %1404 = vmatpush.msrb.mxu2 %v1729_v44 }
 0x324   : > { %1375 = vmatpush.msrb.mxu1 %v1740_v10  ;;  %1405 = vmatpush.msrb.mxu2 %v1734_v21 }
 0x325   : > { %v1743_v7 = vpop.permute.xlu1 %1742 }
 0x326   : > { %1406 = vmatpush.msrb.mxu2 %v1739_v23  ;;  %v1745_v58 = vunpack.i.h.bf16 %v1743_v7  ;;  %v1744_v17 = vunpack.i.l.bf16 %v1743_v7 }
 0x328   : > { %1376 = vmatpush.msrb.mxu1 %v1745_v58  ;;  %1407 = vmatpush.msrb.mxu2 %v1744_v17 }
 0x32d   : > { %v1748_v16 = vpop.permute.xlu0 %1747  ;;  %v1758_v37 = vpop.permute.xlu1 %1757 }
 0x32e   : > { %v1750_v20 = vunpack.i.h.bf16 %v1748_v16  ;;  %v1749_v49 = vunpack.i.l.bf16 %v1748_v16  ;;  %v1760_v28 = vunpack.i.h.bf16 %v1758_v37  ;;  %v1759_v1 = vunpack.i.l.bf16 %v1758_v37 }
 0x330   : > { %1377 = vmatpush.msrb.mxu1 %v1750_v20  ;;  %1408 = vmatpush.msrb.mxu2 %v1749_v49 }
 0x332   : > { %1378 = vmatpush.msrb.mxu1 %v1755_v55  ;;  %1409 = vmatpush.msrb.mxu2 %v1754_v27 }
 0x334   : > { %1379 = vmatpush.msrb.mxu1 %v1760_v28  ;;  %1410 = vmatpush.msrb.mxu2 %v1759_v1 }
 0x335   : > { %v1763_v59 = vpop.permute.xlu0 %1762  ;;  %1555 = vmatmul.msk.f32.vlgmr.msrb.gmra.mxu2 %vm1183_vm3, %v1999_v45  ;;  %vm1181_vm3 = vcmp.lt.s32.totalorder %v1153_v47, %v1173_v43 }
 0x336   : > { %v1764_v40 = vunpack.i.l.bf16 %v1763_v59  ;;  %v1765_v42 = vunpack.i.h.bf16 %v1763_v59  ;;  %vm1189_vm5 = vmand %vm1165_vm2, %vm1181_vm3 }
 0x338   : > { %1380 = vmatpush.msrb.mxu1 %v1764_v40 }
 0x33a   : > { %1381 = vmatpush.msrb.mxu1 %v1765_v42 }
 0x33b   : > { %1551 = vmatmul.msk.f32.vlgmr.msrb.gmra.mxu1 %vm1182_vm8, %v1999_v45  ;;  %vm1188_vm8 = vmand %vm1164_vm6, %vm1180_vm7 }
 0x33d   : > { %1556 = vmatmul.msk.f32.gmra.mxu2 %vm1185_vm9, %v1999_v45 }
 0x343   : > { %1552 = vmatmul.msk.f32.gmra.mxu1 %vm1184_vm14, %v1999_v45 }
 0x345   : > { %1557 = vmatmul.msk.f32.gmra.mxu2 %vm1187_vm15, %v1999_v45 }
 0x34b   : > { %1553 = vmatmul.msk.f32.gmra.mxu1 %vm1186_vm4, %v1999_v45 }
 0x34d   : > { %1558 = vmatmul.msk.f32.gmra.mxu2 %vm1189_vm5, %v1999_v45 }
 0x353   : > { %1554 = vmatmul.msk.f32.gmra.mxu1 %vm1188_vm8, %v1999_v45 }
 0x3b8   : > { %v1383_v22 = vpop.f32.mrf.mxu1  ;;  %v1412_v29 = vpop.f32.mrf.mxu2 }
 0x3b9   : > { %v1413_v30 = vadd.f32 %v1412_v29, %v1383_v22 }
 0x3bb   : > { %v1424_v53 = vsub.f32 0.0, %v1413_v30 }
 0x3bd   : > { %1428 = vst [vmem:[%s181_s18] sm:$0xff] %v1424_v53 }
 0x3c0   : > { %v1386_v19 = vpop.f32.mrf.mxu1  ;;  %v1415_v50 = vpop.f32.mrf.mxu2 }
 0x3c1   : > { %v1416_v56 = vadd.f32 %v1415_v50, %v1386_v19 }
 0x3c3   : > { %v1425_v5 = vsub.f32 0.0, %v1416_v56 }
 0x3c5   : > { %1429 = vst [vmem:[%s181_s18 + $0x8] sm:$0xff] %v1425_v5 }
 0x3c8   : > { %v1389_v18 = vpop.f32.mrf.mxu1  ;;  %v1418_v12 = vpop.f32.mrf.mxu2 }
 0x3c9   : > { %v1419_v35 = vadd.f32 %v1418_v12, %v1389_v18 }
 0x3cb   : > { %v1426_v62 = vsub.f32 0.0, %v1419_v35 }
 0x3cd   : > { %1430 = vst [vmem:[%s181_s18 + $0x10] sm:$0xff] %v1426_v62 }
 0x3d0   : > { %v1392_v8 = vpop.f32.mrf.mxu1  ;;  %v1421_v3 = vpop.f32.mrf.mxu2 }
 0x3d1   : > { %v1422_v39 = vadd.f32 %v1421_v3, %v1392_v8 }
 0x3d3   : > { %v1427_v46 = vsub.f32 0.0, %v1422_v39 }
 0x3d5   : > { %1431 = vst [vmem:[%s181_s18 + $0x18] sm:$0xff] %v1427_v46 }
 0x3d6   : > { %1945 = shalt.err (!%p1942_p10)
}
 0x3d7   : > { %s2000_s5 = smov 128   ;;  %s2001_s20 = smov 8  }
 0x3d8   : > { %1621 = dma.vmem_to_hbm [thread:$0]  (%p2084_p7), %s1446_s25, 512, %s1448_s26, %s1433_s27, %s2000_s5, %s2000_s5, %s2001_s20  }
 0x3d9 PF: > { %s1462_s15 = sand.u32 1, %s1976_s9   ;;  %p3162_p12 = scmp.ge.s32.totalorder %s1988_s12, 2 }
 0x3da   : > { %s1463_s8 = scalar_lea.sflag [#allocation4], %s1462_s15 }
 0x3db   : > { %p1632_p13 = pnand %p3162_p12, %p2052_p6 }
 0x3dd   : > { %p1633_p0 = pneg %p1632_p13 }
 0x3df   : > { %1971 = dma.done.wait (%p1633_p0), %s1463_s8, 512  }
 0x3e0   : > { %1973 = vsyncadd (%p1633_p0), %s1463_s8, 4294966784  ;;  %p16_p3 = scmp.ge.s32.totalorder %s2070_s23, 4   ;;  %s3163_s9 = smov %s1980_s10 }
 0x3e1   : > { %s3164_s10 = smov %s1984_s11  ;;  %s3165_s11 = smov %s2080_s28 }
 0x3e2   : > { %s3166_s12 = smov %s2070_s23  ;;  %18 = sbr.rel (!%p16_p3) target bundleno = 6 (0x6), region = 77 }
 0x3e7   :  { %1469 = vsyncpa [#allocation3], 1 }
 0x3e8   :  { %1471 = vsyncpa [#allocation3 + $0x1], 1 }
 0x3e9   :  { %1472 = vsyncpa [#allocation6], 1 }
 0x3ea   :  { %1473 = vsyncpa [#allocation4], 1 }
 0x3eb   :  { %1475 = vsyncpa [#allocation4 + $0x1], 1 }

</bundles_post_ra>
